<compile_context>
chip_gen: v6e
topology: v6e:2x2x1
jax: 0.10.0
libtpu: 0.0.40
codegen_flags: <defaults>
</compile_context>

<pallas_src>
import functools

import jax
import jax.numpy as jnp
from jax import lax
from jax.experimental import pallas as pl
from jax.experimental.pallas import tpu as pltpu

# ---- stand-in dims --------------------------------------------------------
D_EMBED = 32      # shared image/text feature dim
D_PAD = 128       # lane-dense padded feature dim (multiple of 128)
C_STEM = 16       # conv stem output channels
FFN_DIM = 128     # transformer FFN hidden size (== D_PAD so b1 fills one row)
VOCAB = 64
MAX_SEQ = 16

# rows of the packed (8, 128) text const table
ROW_BQKV, ROW_B1, ROW_BO, ROW_B2 = 0, 1, 2, 3
ROW_LN1G, ROW_LN1B, ROW_LN2G, ROW_LN2B = 4, 5, 6, 7

assert FFN_DIM == D_PAD


def _layernorm(x, gamma, beta, eps=1e-12):
    mu = jnp.mean(x, axis=-1, keepdims=True)
    var = jnp.mean((x - mu) ** 2, axis=-1, keepdims=True)
    return (x - mu) * lax.rsqrt(var + eps) * gamma + beta


# ---------------------------------------------------------------------------
# Fused ALIGN kernel: image encoder + text encoder + contrastive head.
# ---------------------------------------------------------------------------
def _align_kernel(patch_ref, pool_ref, x_ref, bias_ref,
                  w_stem_ref, w_proj_ref, b_proj_ref,
                  wqkv_ref, wo_ref, w1_ref, w2_ref, c_ref,
                  out_ref, *, inv_temp):
    # ---- image path (conv stem as im2col matmul, bias folded in row K) ----
    h = jnp.dot(patch_ref[...], w_stem_ref[...],
                preferred_element_type=jnp.float32)              # (B*HW, C_STEM)
    h = jax.nn.silu(h)
    pooled = jnp.dot(pool_ref[...], h,                            # global avg pool on the MXU
                     preferred_element_type=jnp.float32)          # (B, C_STEM)
    img = jnp.dot(pooled, w_proj_ref[...],
                  preferred_element_type=jnp.float32) + b_proj_ref[...]  # (B, D_PAD)

    # ---- text path: one transformer block over the whole batch ----
    B, S, D = x_ref.shape
    x = x_ref[...].reshape(B * S, D)                              # (B*S, D)
    c = c_ref[...]                                                # (8, 128) packed biases / LN params

    # fused Q|K|V projection: one lane-dense (D, 128) matmul instead of 3 tiny ones
    qkv = jnp.dot(x, wqkv_ref[...],
                  preferred_element_type=jnp.float32) + c[ROW_BQKV:ROW_BQKV + 1, :]
    q = qkv[:, 0:D].reshape(B, S, D)
    k = qkv[:, D:2 * D].reshape(B, S, D)
    v = qkv[:, 2 * D:3 * D].reshape(B, S, D)

    scores = jnp.einsum('bqd,bkd->bqk', q, k, preferred_element_type=jnp.float32)
    scores = scores * (1.0 / (D ** 0.5)) + bias_ref[...][:, None, :]   # additive pad mask
    p = jax.nn.softmax(scores, axis=-1)
    ctx = jnp.einsum('bqk,bkd->bqd', p, v,
                     preferred_element_type=jnp.float32).reshape(B * S, D)
    attn = jnp.dot(ctx, wo_ref[...],
                   preferred_element_type=jnp.float32) + c[ROW_BO:ROW_BO + 1, :D]

    h1 = _layernorm(x + attn, c[ROW_LN1G:ROW_LN1G + 1, :D], c[ROW_LN1B:ROW_LN1B + 1, :D])
    ffn = jax.nn.gelu(jnp.dot(h1, w1_ref[...],
                              preferred_element_type=jnp.float32) + c[ROW_B1:ROW_B1 + 1, :])
    ffn = jnp.dot(ffn, w2_ref[...],
                  preferred_element_type=jnp.float32) + c[ROW_B2:ROW_B2 + 1, :D]
    h2 = _layernorm(h1 + ffn, c[ROW_LN2G:ROW_LN2G + 1, :D], c[ROW_LN2B:ROW_LN2B + 1, :D])

    cls = h2.reshape(B, S, D)[:, 0, :]                            # BERT-style [:, 0, :] pooling

    # ---- ALIGN head: logits = text @ image.T * (1/temperature) ----
    logits = lax.dot_general(cls, img[:, :D], (((1,), (1,)), ((), ())),
                             preferred_element_type=jnp.float32)
    out_ref[...] = logits * inv_temp


# ---------------------------------------------------------------------------
# Wrapper: im2col + embedding gather are wrapper glue, everything else in-kernel.
# ---------------------------------------------------------------------------
def align_forward(params, images, input_ids, attention_mask, temperature=1.0):
    B, C, H, W = images.shape
    _, S = input_ids.shape
    K = 9 * C
    Kp = params["w_stem_aug"].shape[0]
    HW = H * W

    # -- im2col for the 3x3 same-pad conv stem (wrapper glue at toy sizes) --
    x = jnp.transpose(images, (0, 2, 3, 1)).astype(jnp.float32)        # NCHW -> NHWC
    xp = jnp.pad(x, ((0, 0), (1, 1), (1, 1), (0, 0)))
    cols = [xp[:, i:i + H, j:j + W, :] for i in range(3) for j in range(3)]
    patches = jnp.stack(cols, axis=3).reshape(B, HW, K)
    # pad contraction dim K=9C -> Kp with a ones column at index K so the stem
    # bias rides inside w_stem_aug (one fewer input / bias add in the kernel).
    patches = jnp.concatenate(
        [patches,
         jnp.ones((B, HW, 1), jnp.float32),
         jnp.zeros((B, HW, Kp - K - 1), jnp.float32)], axis=-1)
    patches_flat = patches.reshape(B * HW, Kp)                          # one big MXU tile

    # block-diagonal average-pool matrix: pooled = pool @ silu(stem) (MXU reduce)
    pool = (jnp.kron(jnp.eye(B, dtype=jnp.float32),
                     jnp.ones((1, HW), jnp.float32)) / float(HW))       # (B, B*HW), const-folded

    # -- token / position embedding gather (wrapper glue) --
    tok = params["tok_emb"][input_ids]
    x_emb = (tok + params["pos_emb"][None, :S, :]).astype(jnp.float32)  # (B, S, D)
    bias = (1.0 - attention_mask.astype(jnp.float32)) * -1e9            # additive mask (B, S)

    kernel = functools.partial(_align_kernel, inv_temp=float(1.0 / temperature))
    full2 = lambda i: (0, 0)
    full3 = lambda i: (0, 0, 0)

    return pl.pallas_call(
        kernel,
        out_shape=jax.ShapeDtypeStruct((B, B), jnp.float32),
        grid=(1,),
        in_specs=[
            pl.BlockSpec((B * HW, Kp), full2),        # im2col patches (+ones col), whole batch
            pl.BlockSpec((B, B * HW), full2),         # block-diagonal avg-pool matrix
            pl.BlockSpec((B, S, D_EMBED), full3),     # text hidden states, whole batch
            pl.BlockSpec((B, S), full2),              # attention bias
            pl.BlockSpec((Kp, C_STEM), full2),        # conv stem weight (bias folded in)
            pl.BlockSpec((C_STEM, D_PAD), full2),     # image projection (lane-dense)
            pl.BlockSpec((1, D_PAD), full2),          # image projection bias
            pl.BlockSpec((D_EMBED, D_PAD), full2),    # fused Wq|Wk|Wv (|pad)
            pl.BlockSpec((D_EMBED, D_EMBED), full2),  # Wo
            pl.BlockSpec((D_EMBED, FFN_DIM), full2),  # W1
            pl.BlockSpec((FFN_DIM, D_EMBED), full2),  # W2
            pl.BlockSpec((8, D_PAD), full2),          # packed bias / LN const table
        ],
        out_specs=pl.BlockSpec((B, B), full2),
        compiler_params=pltpu.CompilerParams(dimension_semantics=("arbitrary",)),
    )(patches_flat, pool, x_emb, bias,
      params["w_stem_aug"], params["w_proj_pad"], params["b_proj_pad"],
      params["wqkv"], params["wo"], params["w1"], params["w2"],
      params["text_consts"])


# ---------------------------------------------------------------------------
# Parameter init (deterministic stand-ins for the pretrained encoders)
# ---------------------------------------------------------------------------
def init_params(key, in_channels=3):
    ks = jax.random.split(key, 10)
    s = 0.02
    f32 = jnp.float32
    n = lambda k, shp: jax.random.normal(k, shp, f32) * s
    D, F, P = D_EMBED, FFN_DIM, D_PAD
    K = 9 * in_channels
    Kp = ((K + 1 + 7) // 8) * 8                                 # contraction dim padded, +1 ones col

    # ---- image encoder -----------------------------------------------------
    w_stem = n(ks[0], (K, C_STEM))
    b_stem = jnp.zeros((C_STEM,), f32)
    w_stem_aug = jnp.concatenate(                               # row K carries the bias
        [w_stem, b_stem[None, :], jnp.zeros((Kp - K - 1, C_STEM), f32)], axis=0)
    w_proj = n(ks[1], (C_STEM, D))
    w_proj_pad = jnp.concatenate([w_proj, jnp.zeros((C_STEM, P - D), f32)], axis=1)
    b_proj_pad = jnp.zeros((1, P), f32)

    # ---- text encoder -------------------------------------------------------
    tok_emb = n(ks[2], (VOCAB, D))
    pos_emb = n(ks[3], (MAX_SEQ, D))
    wq, wk, wv = n(ks[4], (D, D)), n(ks[5], (D, D)), n(ks[6], (D, D))
    wqkv = jnp.concatenate([wq, wk, wv, jnp.zeros((D, P - 3 * D), f32)], axis=1)  # (D, 128)
    wo = n(ks[7], (D, D))
    w1 = n(ks[8], (D, F))
    w2 = n(ks[9], (F, D))

    pad = lambda v: jnp.concatenate([v, jnp.zeros((P - v.shape[0],), f32)])
    bq = bk = bv = jnp.zeros((D,), f32)
    text_consts = jnp.stack([
        jnp.concatenate([bq, bk, bv, jnp.zeros((P - 3 * D,), f32)]),  # ROW_BQKV
        jnp.zeros((F,), f32),                                         # ROW_B1
        pad(jnp.zeros((D,), f32)),                                    # ROW_BO
        pad(jnp.zeros((D,), f32)),                                    # ROW_B2
        pad(jnp.ones((D,), f32)),                                     # ROW_LN1G
        pad(jnp.zeros((D,), f32)),                                    # ROW_LN1B
        pad(jnp.ones((D,), f32)),                                     # ROW_LN2G
        pad(jnp.zeros((D,), f32)),                                    # ROW_LN2B
    ], axis=0)                                                        # (8, 128) -> one DMA

    return {
        "w_stem_aug": w_stem_aug, "w_proj_pad": w_proj_pad, "b_proj_pad": b_proj_pad,
        "tok_emb": tok_emb, "pos_emb": pos_emb,
        "wqkv": wqkv, "wo": wo, "w1": w1, "w2": w2,
        "text_consts": text_consts,
    }


if __name__ == "__main__":
    B, C, H, W, S = 2, 3, 16, 16, 8

    key = jax.random.PRNGKey(0)
    k_img, k_ids = jax.random.split(key)
    images = jax.random.normal(k_img, (B, C, H, W), jnp.float32)          # NCHW
    input_ids = jax.random.randint(k_ids, (B, S), 0, VOCAB, dtype=jnp.int32)
    attention_mask = jnp.array([[1] * S, [1] * (S - 2) + [0, 0]], dtype=jnp.int32)

    params = init_params(jax.random.PRNGKey(1), in_channels=C)

    fwd = jax.jit(functools.partial(align_forward, temperature=1.0))
    logits = fwd(params, images, input_ids, attention_mask)
    logits = jax.block_until_ready(logits)
    assert logits.shape == (B, B) and logits.dtype == jnp.float32
    assert bool(jnp.all(jnp.isfinite(logits)))
    print("KERNEL_OK")
</pallas_src>

<mosaic_0001>
module attributes {stable_mosaic.version = 11 : i64} {
  func.func @_align_kernel(%arg0: i32, %arg1: memref<512x32xf32, #tpu.memory_space<vmem>>, %arg2: memref<2x512xf32, #tpu.memory_space<vmem>>, %arg3: memref<2x8x32xf32, #tpu.memory_space<vmem>>, %arg4: memref<2x8xf32, #tpu.memory_space<vmem>>, %arg5: memref<32x16xf32, #tpu.memory_space<vmem>>, %arg6: memref<16x128xf32, #tpu.memory_space<vmem>>, %arg7: memref<1x128xf32, #tpu.memory_space<vmem>>, %arg8: memref<32x128xf32, #tpu.memory_space<vmem>>, %arg9: memref<32x32xf32, #tpu.memory_space<vmem>>, %arg10: memref<32x128xf32, #tpu.memory_space<vmem>>, %arg11: memref<128x32xf32, #tpu.memory_space<vmem>>, %arg12: memref<8x128xf32, #tpu.memory_space<vmem>>, %arg13: memref<2x2xf32, #tpu.memory_space<vmem>>) attributes {dimension_semantics = [#tpu.dimension_semantics<arbitrary>], iteration_bounds = array<i64: 1>, scalar_prefetch = 0 : i64, scratch_operands = 0 : i64, tpu.core_type = #tpu.core_type<tc>, window_params = [{pipeline_mode = #tpu.pipeline_mode<synchronous>, transform_indices = @transform_0, window_bounds = array<i64: 512, 32>}, {pipeline_mode = #tpu.pipeline_mode<synchronous>, transform_indices = @transform_1, window_bounds = array<i64: 2, 512>}, {pipeline_mode = #tpu.pipeline_mode<synchronous>, transform_indices = @transform_2, window_bounds = array<i64: 2, 8, 32>}, {pipeline_mode = #tpu.pipeline_mode<synchronous>, transform_indices = @transform_3, window_bounds = array<i64: 2, 8>}, {pipeline_mode = #tpu.pipeline_mode<synchronous>, transform_indices = @transform_4, window_bounds = array<i64: 32, 16>}, {pipeline_mode = #tpu.pipeline_mode<synchronous>, transform_indices = @transform_5, window_bounds = array<i64: 16, 128>}, {pipeline_mode = #tpu.pipeline_mode<synchronous>, transform_indices = @transform_6, window_bounds = array<i64: 1, 128>}, {pipeline_mode = #tpu.pipeline_mode<synchronous>, transform_indices = @transform_7, window_bounds = array<i64: 32, 128>}, {pipeline_mode = #tpu.pipeline_mode<synchronous>, transform_indices = @transform_8, window_bounds = array<i64: 32, 32>}, {pipeline_mode = #tpu.pipeline_mode<synchronous>, transform_indices = @transform_9, window_bounds = array<i64: 32, 128>}, {pipeline_mode = #tpu.pipeline_mode<synchronous>, transform_indices = @transform_10, window_bounds = array<i64: 128, 32>}, {pipeline_mode = #tpu.pipeline_mode<synchronous>, transform_indices = @transform_11, window_bounds = array<i64: 8, 128>}, {pipeline_mode = #tpu.pipeline_mode<synchronous>, transform_indices = @transform_12, window_bounds = array<i64: 2, 2>}]} {
    %c0 = arith.constant 0 : index
    %c0_0 = arith.constant 0 : index
    %0 = vector.load %arg1[%c0, %c0_0] : memref<512x32xf32, #tpu.memory_space<vmem>>, vector<512x32xf32>
    %c0_1 = arith.constant 0 : index
    %c0_2 = arith.constant 0 : index
    %1 = vector.load %arg5[%c0_1, %c0_2] : memref<32x16xf32, #tpu.memory_space<vmem>>, vector<32x16xf32>
    %cst = arith.constant dense<0.000000e+00> : vector<512x16xf32>
    %2 = tpu.matmul %0, %1, %cst {dimension_numbers = #tpu.dot_dimension_numbers<[1], [0], [0], [1], [0, 0, 1, 1], [], []>} : vector<512x32xf32>, vector<32x16xf32>, vector<512x16xf32> -> vector<512x16xf32>
    %3 = arith.negf %2 : vector<512x16xf32>
    %4 = math.exp %3 : vector<512x16xf32>
    %cst_3 = arith.constant 1.000000e+00 : f32
    %5 = vector.broadcast %cst_3 : f32 to vector<512x16xf32>
    %6 = arith.addf %5, %4 : vector<512x16xf32>
    %7 = arith.divf %5, %6 : vector<512x16xf32>
    %8 = arith.mulf %2, %7 : vector<512x16xf32>
    %c0_4 = arith.constant 0 : index
    %c0_5 = arith.constant 0 : index
    %9 = vector.load %arg2[%c0_4, %c0_5] : memref<2x512xf32, #tpu.memory_space<vmem>>, vector<2x512xf32>
    %cst_6 = arith.constant dense<0.000000e+00> : vector<2x16xf32>
    %10 = tpu.matmul %9, %8, %cst_6 {dimension_numbers = #tpu.dot_dimension_numbers<[1], [0], [0], [1], [0, 0, 1, 1], [], []>} : vector<2x512xf32>, vector<512x16xf32>, vector<2x16xf32> -> vector<2x16xf32>
    %c0_7 = arith.constant 0 : index
    %c0_8 = arith.constant 0 : index
    %11 = vector.load %arg6[%c0_7, %c0_8] : memref<16x128xf32, #tpu.memory_space<vmem>>, vector<16x128xf32>
    %cst_9 = arith.constant dense<0.000000e+00> : vector<2x128xf32>
    %12 = tpu.matmul %10, %11, %cst_9 {dimension_numbers = #tpu.dot_dimension_numbers<[1], [0], [0], [1], [0, 0, 1, 1], [], []>} : vector<2x16xf32>, vector<16x128xf32>, vector<2x128xf32> -> vector<2x128xf32>
    %c0_10 = arith.constant 0 : index
    %c0_11 = arith.constant 0 : index
    %13 = vector.load %arg7[%c0_10, %c0_11] : memref<1x128xf32, #tpu.memory_space<vmem>>, vector<1x128xf32>
    %14 = vector.broadcast %13 : vector<1x128xf32> to vector<2x128xf32>
    %15 = arith.addf %12, %14 : vector<2x128xf32>
    %c0_12 = arith.constant 0 : index
    %c0_13 = arith.constant 0 : index
    %c0_14 = arith.constant 0 : index
    %16 = vector.load %arg3[%c0_12, %c0_13, %c0_14] : memref<2x8x32xf32, #tpu.memory_space<vmem>>, vector<2x8x32xf32>
    %17 = vector.shape_cast %16 : vector<2x8x32xf32> to vector<16x32xf32>
    %c0_15 = arith.constant 0 : index
    %c0_16 = arith.constant 0 : index
    %18 = vector.load %arg12[%c0_15, %c0_16] : memref<8x128xf32, #tpu.memory_space<vmem>>, vector<8x128xf32>
    %c0_17 = arith.constant 0 : index
    %c0_18 = arith.constant 0 : index
    %19 = vector.load %arg8[%c0_17, %c0_18] : memref<32x128xf32, #tpu.memory_space<vmem>>, vector<32x128xf32>
    %cst_19 = arith.constant dense<0.000000e+00> : vector<16x128xf32>
    %20 = tpu.matmul %17, %19, %cst_19 {dimension_numbers = #tpu.dot_dimension_numbers<[1], [0], [0], [1], [0, 0, 1, 1], [], []>} : vector<16x32xf32>, vector<32x128xf32>, vector<16x128xf32> -> vector<16x128xf32>
    %21 = vector.extract_strided_slice %18 {offsets = [0, 0], sizes = [1, 128], strides = [1, 1]} : vector<8x128xf32> to vector<1x128xf32>
    %22 = vector.broadcast %21 : vector<1x128xf32> to vector<16x128xf32>
    %23 = arith.addf %20, %22 : vector<16x128xf32>
    %24 = vector.extract_strided_slice %23 {offsets = [0, 0], sizes = [16, 32], strides = [1, 1]} : vector<16x128xf32> to vector<16x32xf32>
    %25 = vector.shape_cast %24 : vector<16x32xf32> to vector<2x8x32xf32>
    %26 = vector.extract_strided_slice %23 {offsets = [0, 32], sizes = [16, 32], strides = [1, 1]} : vector<16x128xf32> to vector<16x32xf32>
    %27 = vector.shape_cast %26 : vector<16x32xf32> to vector<2x8x32xf32>
    %28 = vector.extract_strided_slice %23 {offsets = [0, 64], sizes = [16, 32], strides = [1, 1]} : vector<16x128xf32> to vector<16x32xf32>
    %29 = vector.shape_cast %28 : vector<16x32xf32> to vector<2x8x32xf32>
    "tpu.trace_start"() <{level = 10 : i32, message = "bqd,bkd->bqk"}> : () -> ()
    %cst_20 = arith.constant dense<0.000000e+00> : vector<2x8x8xf32>
    %30 = tpu.matmul %25, %27, %cst_20 {dimension_numbers = #tpu.dot_dimension_numbers<[2], [2], [1], [1], [0, 0, 0, 1, 1, 1], [0], [0]>} : vector<2x8x32xf32>, vector<2x8x32xf32>, vector<2x8x8xf32> -> vector<2x8x8xf32>
    "tpu.trace_stop"() : () -> ()
    %cst_21 = arith.constant 0.176776692 : f32
    %31 = vector.broadcast %cst_21 : f32 to vector<2x8x8xf32>
    %32 = arith.mulf %30, %31 : vector<2x8x8xf32>
    %c0_22 = arith.constant 0 : index
    %c0_23 = arith.constant 0 : index
    %33 = vector.load %arg4[%c0_22, %c0_23] : memref<2x8xf32, #tpu.memory_space<vmem>>, vector<2x8xf32>
    %34 = vector.shape_cast %33 : vector<2x8xf32> to vector<2x1x8xf32>
    %35 = vector.broadcast %34 : vector<2x1x8xf32> to vector<2x8x8xf32>
    %36 = arith.addf %32, %35 : vector<2x8x8xf32>
    %cst_24 = arith.constant dense<0xFF800000> : vector<2x8xf32>
    %37 = vector.multi_reduction <maximumf>, %36, %cst_24 [2] : vector<2x8x8xf32> to vector<2x8xf32>
    %cst_25 = arith.constant 0xFF800000 : f32
    %38 = vector.broadcast %cst_25 : f32 to vector<2x8xf32>
    %39 = arith.maximumf %38, %37 : vector<2x8xf32>
    %40 = vector.shape_cast %39 : vector<2x8xf32> to vector<2x8x1xf32>
    %41 = vector.broadcast %40 : vector<2x8x1xf32> to vector<2x8x8xf32>
    %42 = arith.subf %36, %41 : vector<2x8x8xf32>
    %43 = math.exp %42 : vector<2x8x8xf32>
    %cst_26 = arith.constant dense<0.000000e+00> : vector<2x8xf32>
    %44 = vector.multi_reduction <add>, %43, %cst_26 [2] : vector<2x8x8xf32> to vector<2x8xf32>
    %45 = vector.shape_cast %44 : vector<2x8xf32> to vector<2x8x1xf32>
    %46 = vector.broadcast %45 : vector<2x8x1xf32> to vector<2x8x8xf32>
    %47 = arith.divf %43, %46 : vector<2x8x8xf32>
    "tpu.trace_start"() <{level = 10 : i32, message = "bqk,bkd->bqd"}> : () -> ()
    %cst_27 = arith.constant dense<0.000000e+00> : vector<2x8x32xf32>
    %48 = tpu.matmul %47, %29, %cst_27 {dimension_numbers = #tpu.dot_dimension_numbers<[2], [1], [1], [2], [0, 0, 0, 1, 1, 2], [0], [0]>} : vector<2x8x8xf32>, vector<2x8x32xf32>, vector<2x8x32xf32> -> vector<2x8x32xf32>
    "tpu.trace_stop"() : () -> ()
    %49 = vector.shape_cast %48 : vector<2x8x32xf32> to vector<16x32xf32>
    %c0_28 = arith.constant 0 : index
    %c0_29 = arith.constant 0 : index
    %50 = vector.load %arg9[%c0_28, %c0_29] : memref<32x32xf32, #tpu.memory_space<vmem>>, vector<32x32xf32>
    %cst_30 = arith.constant dense<0.000000e+00> : vector<16x32xf32>
    %51 = tpu.matmul %49, %50, %cst_30 {dimension_numbers = #tpu.dot_dimension_numbers<[1], [0], [0], [1], [0, 0, 1, 1], [], []>} : vector<16x32xf32>, vector<32x32xf32>, vector<16x32xf32> -> vector<16x32xf32>
    %52 = vector.extract_strided_slice %18 {offsets = [2, 0], sizes = [1, 32], strides = [1, 1]} : vector<8x128xf32> to vector<1x32xf32>
    %53 = vector.broadcast %52 : vector<1x32xf32> to vector<16x32xf32>
    %54 = arith.addf %51, %53 : vector<16x32xf32>
    %55 = arith.addf %17, %54 : vector<16x32xf32>
    %56 = vector.extract_strided_slice %18 {offsets = [4, 0], sizes = [1, 32], strides = [1, 1]} : vector<8x128xf32> to vector<1x32xf32>
    %57 = vector.extract_strided_slice %18 {offsets = [5, 0], sizes = [1, 32], strides = [1, 1]} : vector<8x128xf32> to vector<1x32xf32>
    %cst_31 = arith.constant dense<0.000000e+00> : vector<16xf32>
    %58 = vector.multi_reduction <add>, %55, %cst_31 [1] : vector<16x32xf32> to vector<16xf32>
    %59 = vector.shape_cast %58 : vector<16xf32> to vector<16x1xf32>
    %cst_32 = arith.constant 3.200000e+01 : f32
    %60 = vector.broadcast %cst_32 : f32 to vector<16x1xf32>
    %61 = arith.divf %59, %60 : vector<16x1xf32>
    %62 = vector.broadcast %61 : vector<16x1xf32> to vector<16x32xf32>
    %63 = arith.subf %55, %62 : vector<16x32xf32>
    %64 = arith.mulf %63, %63 : vector<16x32xf32>
    %cst_33 = arith.constant dense<0.000000e+00> : vector<16xf32>
    %65 = vector.multi_reduction <add>, %64, %cst_33 [1] : vector<16x32xf32> to vector<16xf32>
    %66 = vector.shape_cast %65 : vector<16xf32> to vector<16x1xf32>
    %cst_34 = arith.constant 3.200000e+01 : f32
    %67 = vector.broadcast %cst_34 : f32 to vector<16x1xf32>
    %68 = arith.divf %66, %67 : vector<16x1xf32>
    %69 = vector.broadcast %61 : vector<16x1xf32> to vector<16x32xf32>
    %70 = arith.subf %55, %69 : vector<16x32xf32>
    %cst_35 = arith.constant 9.99999996E-13 : f32
    %71 = vector.broadcast %cst_35 : f32 to vector<16x1xf32>
    %72 = arith.addf %68, %71 : vector<16x1xf32>
    %73 = math.rsqrt %72 : vector<16x1xf32>
    %74 = vector.broadcast %73 : vector<16x1xf32> to vector<16x32xf32>
    %75 = arith.mulf %70, %74 : vector<16x32xf32>
    %76 = vector.broadcast %56 : vector<1x32xf32> to vector<16x32xf32>
    %77 = arith.mulf %75, %76 : vector<16x32xf32>
    %78 = vector.broadcast %57 : vector<1x32xf32> to vector<16x32xf32>
    %79 = arith.addf %77, %78 : vector<16x32xf32>
    %c0_36 = arith.constant 0 : index
    %c0_37 = arith.constant 0 : index
    %80 = vector.load %arg10[%c0_36, %c0_37] : memref<32x128xf32, #tpu.memory_space<vmem>>, vector<32x128xf32>
    %cst_38 = arith.constant dense<0.000000e+00> : vector<16x128xf32>
    %81 = tpu.matmul %79, %80, %cst_38 {dimension_numbers = #tpu.dot_dimension_numbers<[1], [0], [0], [1], [0, 0, 1, 1], [], []>} : vector<16x32xf32>, vector<32x128xf32>, vector<16x128xf32> -> vector<16x128xf32>
    %82 = vector.extract_strided_slice %18 {offsets = [1, 0], sizes = [1, 128], strides = [1, 1]} : vector<8x128xf32> to vector<1x128xf32>
    %83 = vector.broadcast %82 : vector<1x128xf32> to vector<16x128xf32>
    %84 = arith.addf %81, %83 : vector<16x128xf32>
    %85 = arith.mulf %84, %84 : vector<16x128xf32>
    %86 = arith.mulf %84, %85 : vector<16x128xf32>
    %cst_39 = arith.constant 4.471500e-02 : f32
    %87 = vector.broadcast %cst_39 : f32 to vector<16x128xf32>
    %88 = arith.mulf %87, %86 : vector<16x128xf32>
    %89 = arith.addf %84, %88 : vector<16x128xf32>
    %cst_40 = arith.constant 0.797884583 : f32
    %90 = vector.broadcast %cst_40 : f32 to vector<16x128xf32>
    %91 = arith.mulf %90, %89 : vector<16x128xf32>
    %92 = math.tanh %91 : vector<16x128xf32>
    %cst_41 = arith.constant 1.000000e+00 : f32
    %93 = vector.broadcast %cst_41 : f32 to vector<16x128xf32>
    %94 = arith.addf %93, %92 : vector<16x128xf32>
    %cst_42 = arith.constant 5.000000e-01 : f32
    %95 = vector.broadcast %cst_42 : f32 to vector<16x128xf32>
    %96 = arith.mulf %95, %94 : vector<16x128xf32>
    %97 = arith.mulf %84, %96 : vector<16x128xf32>
    %c0_43 = arith.constant 0 : index
    %c0_44 = arith.constant 0 : index
    %98 = vector.load %arg11[%c0_43, %c0_44] : memref<128x32xf32, #tpu.memory_space<vmem>>, vector<128x32xf32>
    %cst_45 = arith.constant dense<0.000000e+00> : vector<16x32xf32>
    %99 = tpu.matmul %97, %98, %cst_45 {dimension_numbers = #tpu.dot_dimension_numbers<[1], [0], [0], [1], [0, 0, 1, 1], [], []>} : vector<16x128xf32>, vector<128x32xf32>, vector<16x32xf32> -> vector<16x32xf32>
    %100 = vector.extract_strided_slice %18 {offsets = [3, 0], sizes = [1, 32], strides = [1, 1]} : vector<8x128xf32> to vector<1x32xf32>
    %101 = vector.broadcast %100 : vector<1x32xf32> to vector<16x32xf32>
    %102 = arith.addf %99, %101 : vector<16x32xf32>
    %103 = arith.addf %79, %102 : vector<16x32xf32>
    %104 = vector.extract_strided_slice %18 {offsets = [6, 0], sizes = [1, 32], strides = [1, 1]} : vector<8x128xf32> to vector<1x32xf32>
    %105 = vector.extract_strided_slice %18 {offsets = [7, 0], sizes = [1, 32], strides = [1, 1]} : vector<8x128xf32> to vector<1x32xf32>
    %cst_46 = arith.constant dense<0.000000e+00> : vector<16xf32>
    %106 = vector.multi_reduction <add>, %103, %cst_46 [1] : vector<16x32xf32> to vector<16xf32>
    %107 = vector.shape_cast %106 : vector<16xf32> to vector<16x1xf32>
    %cst_47 = arith.constant 3.200000e+01 : f32
    %108 = vector.broadcast %cst_47 : f32 to vector<16x1xf32>
    %109 = arith.divf %107, %108 : vector<16x1xf32>
    %110 = vector.broadcast %109 : vector<16x1xf32> to vector<16x32xf32>
    %111 = arith.subf %103, %110 : vector<16x32xf32>
    %112 = arith.mulf %111, %111 : vector<16x32xf32>
    %cst_48 = arith.constant dense<0.000000e+00> : vector<16xf32>
    %113 = vector.multi_reduction <add>, %112, %cst_48 [1] : vector<16x32xf32> to vector<16xf32>
    %114 = vector.shape_cast %113 : vector<16xf32> to vector<16x1xf32>
    %cst_49 = arith.constant 3.200000e+01 : f32
    %115 = vector.broadcast %cst_49 : f32 to vector<16x1xf32>
    %116 = arith.divf %114, %115 : vector<16x1xf32>
    %117 = vector.broadcast %109 : vector<16x1xf32> to vector<16x32xf32>
    %118 = arith.subf %103, %117 : vector<16x32xf32>
    %cst_50 = arith.constant 9.99999996E-13 : f32
    %119 = vector.broadcast %cst_50 : f32 to vector<16x1xf32>
    %120 = arith.addf %116, %119 : vector<16x1xf32>
    %121 = math.rsqrt %120 : vector<16x1xf32>
    %122 = vector.broadcast %121 : vector<16x1xf32> to vector<16x32xf32>
    %123 = arith.mulf %118, %122 : vector<16x32xf32>
    %124 = vector.broadcast %104 : vector<1x32xf32> to vector<16x32xf32>
    %125 = arith.mulf %123, %124 : vector<16x32xf32>
    %126 = vector.broadcast %105 : vector<1x32xf32> to vector<16x32xf32>
    %127 = arith.addf %125, %126 : vector<16x32xf32>
    %128 = vector.shape_cast %127 : vector<16x32xf32> to vector<2x8x32xf32>
    %129 = vector.extract_strided_slice %128 {offsets = [0, 0, 0], sizes = [2, 1, 32], strides = [1, 1, 1]} : vector<2x8x32xf32> to vector<2x1x32xf32>
    %130 = vector.shape_cast %129 : vector<2x1x32xf32> to vector<2x32xf32>
    %131 = vector.extract_strided_slice %15 {offsets = [0, 0], sizes = [2, 32], strides = [1, 1]} : vector<2x128xf32> to vector<2x32xf32>
    %cst_51 = arith.constant dense<0.000000e+00> : vector<2x2xf32>
    %132 = tpu.matmul %130, %131, %cst_51 {dimension_numbers = #tpu.dot_dimension_numbers<[1], [1], [0], [0], [0, 0, 1, 0], [], []>} : vector<2x32xf32>, vector<2x32xf32>, vector<2x2xf32> -> vector<2x2xf32>
    %cst_52 = arith.constant 1.000000e+00 : f32
    %133 = vector.broadcast %cst_52 : f32 to vector<2x2xf32>
    %134 = arith.mulf %132, %133 : vector<2x2xf32>
    %c0_53 = arith.constant 0 : index
    %c0_54 = arith.constant 0 : index
    %135 = vector.load %arg13[%c0_53, %c0_54] : memref<2x2xf32, #tpu.memory_space<vmem>>, vector<2x2xf32>
    tpu.vector_store %arg13[%c0_53, %c0_54], %134 {strides = array<i32>} : memref<2x2xf32, #tpu.memory_space<vmem>>, vector<2x2xf32>,
    return
  }
  func.func @transform_0(%arg0: i32) -> (i32, i32) {
    %c0_i32 = arith.constant 0 : i32
    %c0_i32_0 = arith.constant 0 : i32
    %c0_i32_1 = arith.constant 0 : i32
    return %c0_i32, %c0_i32_0 : i32, i32
  }
  func.func @transform_1(%arg0: i32) -> (i32, i32) {
    %c0_i32 = arith.constant 0 : i32
    %c0_i32_0 = arith.constant 0 : i32
    %c0_i32_1 = arith.constant 0 : i32
    return %c0_i32, %c0_i32_0 : i32, i32
  }
  func.func @transform_2(%arg0: i32) -> (i32, i32, i32) {
    %c0_i32 = arith.constant 0 : i32
    %c0_i32_0 = arith.constant 0 : i32
    %c0_i32_1 = arith.constant 0 : i32
    %c0_i32_2 = arith.constant 0 : i32
    return %c0_i32, %c0_i32_0, %c0_i32_1 : i32, i32, i32
  }
  func.func @transform_3(%arg0: i32) -> (i32, i32) {
    %c0_i32 = arith.constant 0 : i32
    %c0_i32_0 = arith.constant 0 : i32
    %c0_i32_1 = arith.constant 0 : i32
    return %c0_i32, %c0_i32_0 : i32, i32
  }
  func.func @transform_4(%arg0: i32) -> (i32, i32) {
    %c0_i32 = arith.constant 0 : i32
    %c0_i32_0 = arith.constant 0 : i32
    %c0_i32_1 = arith.constant 0 : i32
    return %c0_i32, %c0_i32_0 : i32, i32
  }
  func.func @transform_5(%arg0: i32) -> (i32, i32) {
    %c0_i32 = arith.constant 0 : i32
    %c0_i32_0 = arith.constant 0 : i32
    %c0_i32_1 = arith.constant 0 : i32
    return %c0_i32, %c0_i32_0 : i32, i32
  }
  func.func @transform_6(%arg0: i32) -> (i32, i32) {
    %c0_i32 = arith.constant 0 : i32
    %c0_i32_0 = arith.constant 0 : i32
    %c0_i32_1 = arith.constant 0 : i32
    return %c0_i32, %c0_i32_0 : i32, i32
  }
  func.func @transform_7(%arg0: i32) -> (i32, i32) {
    %c0_i32 = arith.constant 0 : i32
    %c0_i32_0 = arith.constant 0 : i32
    %c0_i32_1 = arith.constant 0 : i32
    return %c0_i32, %c0_i32_0 : i32, i32
  }
  func.func @transform_8(%arg0: i32) -> (i32, i32) {
    %c0_i32 = arith.constant 0 : i32
    %c0_i32_0 = arith.constant 0 : i32
    %c0_i32_1 = arith.constant 0 : i32
    return %c0_i32, %c0_i32_0 : i32, i32
  }
  func.func @transform_9(%arg0: i32) -> (i32, i32) {
    %c0_i32 = arith.constant 0 : i32
    %c0_i32_0 = arith.constant 0 : i32
    %c0_i32_1 = arith.constant 0 : i32
    return %c0_i32, %c0_i32_0 : i32, i32
  }
  func.func @transform_10(%arg0: i32) -> (i32, i32) {
    %c0_i32 = arith.constant 0 : i32
    %c0_i32_0 = arith.constant 0 : i32
    %c0_i32_1 = arith.constant 0 : i32
    return %c0_i32, %c0_i32_0 : i32, i32
  }
  func.func @transform_11(%arg0: i32) -> (i32, i32) {
    %c0_i32 = arith.constant 0 : i32
    %c0_i32_0 = arith.constant 0 : i32
    %c0_i32_1 = arith.constant 0 : i32
    return %c0_i32, %c0_i32_0 : i32, i32
  }
  func.func @transform_12(%arg0: i32) -> (i32, i32) {
    %c0_i32 = arith.constant 0 : i32
    %c0_i32_0 = arith.constant 0 : i32
    %c0_i32_1 = arith.constant 0 : i32
    return %c0_i32, %c0_i32_0 : i32, i32
  }
}

</mosaic_0001>

<bundles_post_ra>
// kernel: align_forward.1
= control target key start
LH: loop header
LB: loop body
LE: loop exit
PB: predicated region body
PF: predicated region fallthrough
CT: control target
= control target key end

     0   :  { %vm110_vm0 = vcmask 261120   ;;  %s4025_s0 = inlined_call_operand.vmem [shape: f32[512,32], index: 0, kind: input, shape index: {}]   ;;  %s4026_s1 = inlined_call_operand.vmem [shape: f32[2,512], index: 1, kind: input, shape index: {}]   ;;  %s4027_s2 = inlined_call_operand.vmem [shape: f32[2,8,32], index: 2, kind: input, shape index: {}]   ;;  %s4028_s3 = inlined_call_operand.vmem [shape: f32[2,8], index: 3, kind: input, shape index: {}]   ;;  %s4029_s4 = inlined_call_operand.vmem [shape: f32[32,16], index: 4, kind: input, shape index: {}]   ;;  %s4030_s5 = inlined_call_operand.vmem [shape: f32[16,128], index: 5, kind: input, shape index: {}]   ;;  %s4031_s6 = inlined_call_operand.vmem [shape: f32[1,128], index: 6, kind: input, shape index: {}]   ;;  %s4032_s7 = inlined_call_operand.vmem [shape: f32[32,128], index: 7, kind: input, shape index: {}]   ;;  %s4033_s8 = inlined_call_operand.vmem [shape: f32[32,32], index: 8, kind: input, shape index: {}]   ;;  %s4034_s9 = inlined_call_operand.vmem [shape: f32[32,128], index: 9, kind: input, shape index: {}]   ;;  %s4035_s10 = inlined_call_operand.vmem [shape: f32[128,32], index: 10, kind: input, shape index: {}]   ;;  %s4036_s11 = inlined_call_operand.vmem [shape: f32[8,128], index: 11, kind: input, shape index: {}]   ;;  %s4037_s12 = inlined_call_operand.hbm [shape: f32[2,2], index: 12, kind: output, shape index: {}]  }
   0x1   :  { %v109_v0 = vld [vmem:[%s4029_s4 + $0x18] sm:$0xff]  ;;  %v108_v1 = vld [vmem:[%s4029_s4 + $0x10] sm:$0xff]  ;;  %v42_v2 = vld [vmem:[%s4025_s0] sm:$0xff] }
   0x2   :  { %2641 = vmatprep.subr.mxu0 %v109_v0  ;;  %v107_v3 = vld [vmem:[%s4029_s4 + $0x8] sm:$0xff]  ;;  %2649 = vmatprep.mubr.msk.f32.mxu0 %vm110_vm0, %v42_v2  ;;  %v106_v4 = vld [vmem:[%s4029_s4] sm:$0xff]  ;;  %v44_v6 = vld [vmem:[%s4025_s0 + $0x10] sm:$0xff] }
   0x3   :  { %2642 = vmatpush3.msra.mxu0 %v109_v0  ;;  %v43_v5 = vld [vmem:[%s4025_s0 + $0x8] sm:$0xff]  ;;  %v45_v7 = vld [vmem:[%s4025_s0 + $0x18] sm:$0xff]  ;;  %v46_v8 = vld [vmem:[%s4025_s0 + $0x20] sm:$0xff] }
   0x4   :  { %2643 = vmatprep.subr.mxu0 %v108_v1  ;;  %v47_v9 = vld [vmem:[%s4025_s0 + $0x28] sm:$0xff]  ;;  %v48_v10 = vld [vmem:[%s4025_s0 + $0x30] sm:$0xff]  ;;  %v49_v11 = vld [vmem:[%s4025_s0 + $0x38] sm:$0xff] }
   0x5   :  { %2644 = vmatpush3.msra.mxu0 %v108_v1  ;;  %v50_v12 = vld [vmem:[%s4025_s0 + $0x40] sm:$0xff]  ;;  %v51_v13 = vld [vmem:[%s4025_s0 + $0x48] sm:$0xff] }
   0x6   :  { %2645 = vmatprep.subr.mxu0 %v107_v3 }
   0x7   :  { %2646 = vmatpush3.msra.mxu0 %v107_v3 }
   0x8   :  { %2647 = vmatprep.subr.mxu0 %v106_v4 }
   0x9   :  { %2648 = vmatpush3.msra.mxu0 %v106_v4 }
   0xa   :  { %2650 = vmatmul.mubr.msk.f32.vlgmr.msra.gmra.mxu0 %vm110_vm0, %v43_v5 }
   0xb   :  { %2652 = vmatprep.mubr.msk.f32.mxu0 %vm110_vm0, %v44_v6 }
   0xe   :  { %2653 = vmatmul.mubr.msk.f32.gmra.mxu0 %vm110_vm0, %v45_v7 }
   0xf   :  { %2655 = vmatprep.mubr.msk.f32.mxu0 %vm110_vm0, %v46_v8 }
  0x12   :  { %2656 = vmatmul.mubr.msk.f32.gmra.mxu0 %vm110_vm0, %v47_v9 }
  0x13   :  { %2658 = vmatprep.mubr.msk.f32.mxu0 %vm110_vm0, %v48_v10 }
  0x16   :  { %2659 = vmatmul.mubr.msk.f32.gmra.mxu0 %vm110_vm0, %v49_v11 }
  0x17   :  { %2661 = vmatprep.mubr.msk.f32.mxu0 %vm110_vm0, %v50_v12 }
  0x18   :  { %17 = vsyncpa [#allocation3], 0  ;;  %v52_v14 = vld [vmem:[%s4025_s0 + $0x50] sm:$0xff]  ;;  %v53_v15 = vld [vmem:[%s4025_s0 + $0x58] sm:$0xff]  ;;  %vm3153_vm1 = vmmov 0   ;;  %vm1308_vm2 = vcmask 130048  }
  0x19   :  { %v54_v16 = vld [vmem:[%s4025_s0 + $0x60] sm:$0xff]  ;;  %v55_v17 = vld [vmem:[%s4025_s0 + $0x68] sm:$0xff]  ;;  %v56_v18 = vld [vmem:[%s4025_s0 + $0x70] sm:$0xff]  ;;  %vm1666_vm3 = vcmask 64512   ;;  %vm2216_vm4 = vcmask 1041409   ;;  %vm2293_vm5 = vcmask 9216  }
  0x1a   :  { %2662 = vmatmul.mubr.msk.f32.gmra.mxu0 %vm110_vm0, %v51_v13  ;;  %v57_v19 = vld [vmem:[%s4025_s0 + $0x78] sm:$0xff]  ;;  %v58_v20 = vld [vmem:[%s4025_s0 + $0x80] sm:$0xff]  ;;  %v59_v21 = vld [vmem:[%s4025_s0 + $0x88] sm:$0xff] }
  0x1b   :  { %2664 = vmatprep.mubr.msk.f32.mxu0 %vm110_vm0, %v52_v14  ;;  %v60_v22 = vld [vmem:[%s4025_s0 + $0x90] sm:$0xff]  ;;  %v61_v23 = vld [vmem:[%s4025_s0 + $0x98] sm:$0xff]  ;;  %v62_v24 = vld [vmem:[%s4025_s0 + $0xa0] sm:$0xff] }
  0x1c   :  { %v63_v25 = vld [vmem:[%s4025_s0 + $0xa8] sm:$0xff]  ;;  %v64_v26 = vld [vmem:[%s4025_s0 + $0xb0] sm:$0xff]  ;;  %v65_v27 = vld [vmem:[%s4025_s0 + $0xb8] sm:$0xff] }
  0x1d   :  { %v66_v28 = vld [vmem:[%s4025_s0 + $0xc0] sm:$0xff]  ;;  %v67_v29 = vld [vmem:[%s4025_s0 + $0xc8] sm:$0xff]  ;;  %v68_v30 = vld [vmem:[%s4025_s0 + $0xd0] sm:$0xff] }
  0x1e   :  { %2665 = vmatmul.mubr.msk.f32.gmra.mxu0 %vm110_vm0, %v53_v15  ;;  %v69_v31 = vld [vmem:[%s4025_s0 + $0xd8] sm:$0xff]  ;;  %v70_v32 = vld [vmem:[%s4025_s0 + $0xe0] sm:$0xff]  ;;  %v71_v33 = vld [vmem:[%s4025_s0 + $0xe8] sm:$0xff]  ;;  %v3151_v15 = vmov 1983009808  }
  0x1f   :  { %2667 = vmatprep.mubr.msk.f32.mxu0 %vm110_vm0, %v54_v16  ;;  %v72_v34 = vld [vmem:[%s4025_s0 + $0xf0] sm:$0xff]  ;;  %v73_v35 = vld [vmem:[%s4025_s0 + $0xf8] sm:$0xff]  ;;  %v74_v36 = vld [vmem:[%s4025_s0 + $0x100] sm:$0xff]  ;;  %v1140_v16 = vunpack.c.l.s4 %v3151_v15 }
  0x20   :  { %v75_v37 = vld [vmem:[%s4025_s0 + $0x108] sm:$0xff]  ;;  %v76_v38 = vld [vmem:[%s4025_s0 + $0x110] sm:$0xff]  ;;  %v77_v39 = vld [vmem:[%s4025_s0 + $0x118] sm:$0xff] }
  0x21   :  { %v78_v40 = vld [vmem:[%s4025_s0 + $0x120] sm:$0xff]  ;;  %v79_v41 = vld [vmem:[%s4025_s0 + $0x128] sm:$0xff]  ;;  %v80_v42 = vld [vmem:[%s4025_s0 + $0x130] sm:$0xff] }
  0x22   :  { %2668 = vmatmul.mubr.msk.f32.gmra.mxu0 %vm110_vm0, %v55_v17  ;;  %v81_v43 = vld [vmem:[%s4025_s0 + $0x138] sm:$0xff]  ;;  %v82_v44 = vld [vmem:[%s4025_s0 + $0x140] sm:$0xff]  ;;  %v83_v45 = vld [vmem:[%s4025_s0 + $0x148] sm:$0xff]  ;;  %v1142_v17 = vlaneseq }
  0x23   :  { %2670 = vmatprep.mubr.msk.f32.mxu0 %vm110_vm0, %v56_v18  ;;  %v84_v46 = vld [vmem:[%s4025_s0 + $0x150] sm:$0xff]  ;;  %v85_v47 = vld [vmem:[%s4025_s0 + $0x158] sm:$0xff]  ;;  %v86_v48 = vld [vmem:[%s4025_s0 + $0x160] sm:$0xff] }
  0x24   :  { %v87_v49 = vld [vmem:[%s4025_s0 + $0x168] sm:$0xff]  ;;  %v88_v50 = vld [vmem:[%s4025_s0 + $0x170] sm:$0xff]  ;;  %v89_v51 = vld [vmem:[%s4025_s0 + $0x178] sm:$0xff] }
  0x25   :  { %v90_v52 = vld [vmem:[%s4025_s0 + $0x180] sm:$0xff]  ;;  %v91_v53 = vld [vmem:[%s4025_s0 + $0x188] sm:$0xff]  ;;  %v92_v54 = vld [vmem:[%s4025_s0 + $0x190] sm:$0xff] }
  0x26   :  { %2671 = vmatmul.mubr.msk.f32.gmra.mxu0 %vm110_vm0, %v57_v19  ;;  %v93_v55 = vld [vmem:[%s4025_s0 + $0x198] sm:$0xff]  ;;  %v94_v56 = vld [vmem:[%s4025_s0 + $0x1a0] sm:$0xff]  ;;  %v95_v57 = vld [vmem:[%s4025_s0 + $0x1a8] sm:$0xff]  ;;  %v1141_v19 = vunpack.c.0.s8 %v1140_v16 }
  0x27   :  { %2673 = vmatprep.mubr.msk.f32.mxu0 %vm110_vm0, %v58_v20  ;;  %v96_v58 = vld [vmem:[%s4025_s0 + $0x1b0] sm:$0xff]  ;;  %v97_v59 = vld [vmem:[%s4025_s0 + $0x1b8] sm:$0xff]  ;;  %v98_v60 = vld [vmem:[%s4025_s0 + $0x1c0] sm:$0xff]  ;;  %v3515_v20 = vshrl.u32 %v1142_v17, 7 }
  0x28   :  { %v99_v61 = vld [vmem:[%s4025_s0 + $0x1c8] sm:$0xff]  ;;  %v100_v62 = vld [vmem:[%s4025_s0 + $0x1d0] sm:$0xff]  ;;  %v101_v63 = vld [vmem:[%s4025_s0 + $0x1d8] sm:$0xff] }
  0x29   :  { %v102_v0 = vld [vmem:[%s4025_s0 + $0x1e0] sm:$0xff]  ;;  %v103_v1 = vld [vmem:[%s4025_s0 + $0x1e8] sm:$0xff]  ;;  %v104_v2 = vld [vmem:[%s4025_s0 + $0x1f0] sm:$0xff]  ;;  %4061 = vst [vmem:[#allocation10_spill] sm:$0xff] %v3515_v20 }
  0x2a   :  { %2674 = vmatmul.mubr.msk.f32.gmra.mxu0 %vm110_vm0, %v59_v21  ;;  %v105_v3 = vld [vmem:[%s4025_s0 + $0x1f8] sm:$0xff] }
  0x2b   :  { %2676 = vmatprep.mubr.msk.f32.mxu0 %vm110_vm0, %v60_v22  ;;  %v1144_v22 = vsub.s32 %v1141_v19, %v3515_v20 }
  0x2e   :  { %2677 = vmatmul.mubr.msk.f32.gmra.mxu0 %vm110_vm0, %v61_v23  ;;  %v1136_v23 = vld [vmem:[%s4026_s1] sm:$0xff] }
  0x2f   :  { %2679 = vmatprep.mubr.msk.f32.mxu0 %vm110_vm0, %v62_v24 }
  0x32   :  { %2680 = vmatmul.mubr.msk.f32.gmra.mxu0 %vm110_vm0, %v63_v25  ;;  %v3525_v25 = vrot.slane %v1136_v23, %v1144_v22 }
  0x33   :  { %2682 = vmatprep.mubr.msk.f32.mxu0 %vm110_vm0, %v64_v26 }
  0x34   :  { %4062 = vst [vmem:[#allocation11_spill] sm:$0xff] %v3525_v25 }
  0x36   :  { %2683 = vmatmul.mubr.msk.f32.gmra.mxu0 %vm110_vm0, %v65_v27  ;;  %v1153_v27 = vcombine.high %v3525_v25, %v3525_v25 }
  0x37   :  { %2685 = vmatprep.mubr.msk.f32.mxu0 %vm110_vm0, %v66_v28 }
  0x38   :  { %1223 = vmatprep.mubr.f32.mxu1 %v1153_v27 }
  0x3a   :  { %2686 = vmatmul.mubr.msk.f32.gmra.mxu0 %vm110_vm0, %v67_v29 }
  0x3b   :  { %2688 = vmatprep.mubr.msk.f32.mxu0 %vm110_vm0, %v68_v30 }
  0x3e   :  { %2689 = vmatmul.mubr.msk.f32.gmra.mxu0 %vm110_vm0, %v69_v31 }
  0x3f   :  { %2691 = vmatprep.mubr.msk.f32.mxu0 %vm110_vm0, %v70_v32 }
  0x42   :  { %2692 = vmatmul.mubr.msk.f32.gmra.mxu0 %vm110_vm0, %v71_v33 }
  0x43   :  { %2694 = vmatprep.mubr.msk.f32.mxu0 %vm110_vm0, %v72_v34 }
  0x46   :  { %2695 = vmatmul.mubr.msk.f32.gmra.mxu0 %vm110_vm0, %v73_v35 }
  0x47   :  { %2697 = vmatprep.mubr.msk.f32.mxu0 %vm110_vm0, %v74_v36 }
  0x4a   :  { %2698 = vmatmul.mubr.msk.f32.gmra.mxu0 %vm110_vm0, %v75_v37 }
  0x4b   :  { %2700 = vmatprep.mubr.msk.f32.mxu0 %vm110_vm0, %v76_v38 }
  0x4e   :  { %2701 = vmatmul.mubr.msk.f32.gmra.mxu0 %vm110_vm0, %v77_v39 }
  0x4f   :  { %2703 = vmatprep.mubr.msk.f32.mxu0 %vm110_vm0, %v78_v40 }
  0x52   :  { %2704 = vmatmul.mubr.msk.f32.gmra.mxu0 %vm110_vm0, %v79_v41 }
  0x53   :  { %2706 = vmatprep.mubr.msk.f32.mxu0 %vm110_vm0, %v80_v42 }
  0x56   :  { %2707 = vmatmul.mubr.msk.f32.gmra.mxu0 %vm110_vm0, %v81_v43 }
  0x57   :  { %2709 = vmatprep.mubr.msk.f32.mxu0 %vm110_vm0, %v82_v44 }
  0x5a   :  { %2710 = vmatmul.mubr.msk.f32.gmra.mxu0 %vm110_vm0, %v83_v45 }
  0x5b   :  { %2712 = vmatprep.mubr.msk.f32.mxu0 %vm110_vm0, %v84_v46 }
  0x5e   :  { %2713 = vmatmul.mubr.msk.f32.gmra.mxu0 %vm110_vm0, %v85_v47 }
  0x5f   :  { %2715 = vmatprep.mubr.msk.f32.mxu0 %vm110_vm0, %v86_v48 }
  0x62   :  { %2716 = vmatmul.mubr.msk.f32.gmra.mxu0 %vm110_vm0, %v87_v49 }
  0x63   :  { %2718 = vmatprep.mubr.msk.f32.mxu0 %vm110_vm0, %v88_v50 }
  0x66   :  { %2719 = vmatmul.mubr.msk.f32.gmra.mxu0 %vm110_vm0, %v89_v51 }
  0x67   :  { %2721 = vmatprep.mubr.msk.f32.mxu0 %vm110_vm0, %v90_v52 }
  0x6a   :  { %2722 = vmatmul.mubr.msk.f32.gmra.mxu0 %vm110_vm0, %v91_v53 }
  0x6b   :  { %2724 = vmatprep.mubr.msk.f32.mxu0 %vm110_vm0, %v92_v54 }
  0x6e   :  { %2725 = vmatmul.mubr.msk.f32.gmra.mxu0 %vm110_vm0, %v93_v55 }
  0x6f   :  { %2727 = vmatprep.mubr.msk.f32.mxu0 %vm110_vm0, %v94_v56 }
  0x72   :  { %2728 = vmatmul.mubr.msk.f32.gmra.mxu0 %vm110_vm0, %v95_v57  ;;  %v1138_v57 = vcombine.high %v1136_v23, %v1136_v23 }
  0x73   :  { %2730 = vmatprep.mubr.msk.f32.mxu0 %vm110_vm0, %v96_v58 }
  0x76   :  { %2731 = vmatmul.mubr.msk.f32.gmra.mxu0 %vm110_vm0, %v97_v59 }
  0x77   :  { %2733 = vmatprep.mubr.msk.f32.mxu0 %vm110_vm0, %v98_v60 }
  0x7a   :  { %2734 = vmatmul.mubr.msk.f32.gmra.mxu0 %vm110_vm0, %v99_v61 }
  0x7b   :  { %2736 = vmatprep.mubr.msk.f32.mxu0 %vm110_vm0, %v100_v62 }
  0x7e   :  { %2737 = vmatmul.mubr.msk.f32.gmra.mxu0 %vm110_vm0, %v101_v63 }
  0x7f   :  { %2739 = vmatprep.mubr.msk.f32.mxu0 %vm110_vm0, %v102_v0 }
  0x82   :  { %2740 = vmatmul.mubr.msk.f32.gmra.mxu0 %vm110_vm0, %v103_v1  ;;  %v3581_v1 = vrot.slane %v1138_v57, %v1144_v22 }
  0x83   :  { %2742 = vmatprep.mubr.msk.f32.mxu0 %vm110_vm0, %v104_v2 }
  0x84   :  { %4067 = vst [vmem:[#allocation16_spill] sm:$0xff] %v3581_v1 }
  0x86   :  { %2743 = vmatmul.mubr.msk.f32.gmra.mxu0 %vm110_vm0, %v105_v3 }
  0xca   :  { %v3491_v4 = vpop.f32.mrf.mxu0 }
  0xcb   :  { %4056 = vst [vmem:[#allocation5_spill] sm:$0xff] %v3491_v4  ;;  %v2374_v28 = vmul.f32 -1.442695, %v3491_v4 }
  0xcc   :  { %v3493_v5 = vpop.f32.mrf.mxu0 }
  0xcd   :  { %4057 = vst [vmem:[#allocation6_spill] sm:$0xff] %v3493_v5  ;;  %2853 = vpow2.f32 %v2374_v28  ;;  %v2373_v35 = vmul.f32 -1.442695, %v3493_v5 }
  0xce   :  { %v3495_v6 = vpop.f32.mrf.mxu0 }
  0xcf   :  { %4058 = vst [vmem:[#allocation7_spill] sm:$0xff] %v3495_v6  ;;  %v2376_v37 = vmul.f32 -1.442695, %v3495_v6  ;;  %2855 = vpow2.f32 %v2373_v35 }
  0xd0   :  { %v3497_v7 = vpop.f32.mrf.mxu0 }
  0xd1   :  { %4059 = vst [vmem:[#allocation8_spill] sm:$0xff] %v3497_v7  ;;  %v2375_v38 = vmul.f32 -1.442695, %v3497_v7  ;;  %2857 = vpow2.f32 %v2376_v37 }
  0xd2   :  { %v3499_v8 = vpop.f32.mrf.mxu0 }
  0xd3   :  { %v2378_v40 = vmul.f32 -1.442695, %v3499_v8  ;;  %2859 = vpow2.f32 %v2375_v38 }
  0xd4   :  { %v3501_v9 = vpop.f32.mrf.mxu0 }
  0xd5   :  { %4060 = vst [vmem:[#allocation9_spill] sm:$0xff] %v3501_v9  ;;  %v2377_v42 = vmul.f32 -1.442695, %v3501_v9  ;;  %2861 = vpow2.f32 %v2378_v40 }
  0xd6   :  { %v3503_v10 = vpop.f32.mrf.mxu0 }
  0xd7   :  { %v2380_v44 = vmul.f32 -1.442695, %v3503_v10  ;;  %2863 = vpow2.f32 %v2377_v42 }
  0xd8   :  { %v3505_v11 = vpop.f32.mrf.mxu0 }
  0xd9   :  { %v2379_v45 = vmul.f32 -1.442695, %v3505_v11  ;;  %2865 = vpow2.f32 %v2380_v44 }
  0xda   :  { %v3507_v12 = vpop.f32.mrf.mxu0  ;;  %v2854_v41 = vpop.eup %2853 }
  0xdb   :  { %v881_v47 = vadd.f32 1.0, %v2854_v41  ;;  %v2382_v48 = vmul.f32 -1.442695, %v3507_v12  ;;  %2867 = vpow2.f32 %v2379_v45 }
  0xdc   :  { %v3509_v13 = vpop.f32.mrf.mxu0  ;;  %v3578_v63 = vpop.eup %2855 }
  0xdd   :  { %v2381_v50 = vmul.f32 -1.442695, %v3509_v13  ;;  %2869 = vrcp.f32 %v881_v47 }
  0xde   :  { %v3511_v14 = vpop.f32.mrf.mxu0  ;;  %2871 = vpow2.f32 %v2382_v48  ;;  %v3583_v2 = vpop.eup %2857 }
  0xdf   :  { %v2384_v51 = vmul.f32 -1.442695, %v3511_v14  ;;  %2873 = vpow2.f32 %v2381_v50 }
  0xe0   :  { %v3513_v18 = vpop.f32.mrf.mxu0  ;;  %v3587_v15 = vpop.eup %2859 }
  0xe1   :  { %v2383_v53 = vmul.f32 -1.442695, %v3513_v18  ;;  %2875 = vpow2.f32 %v2384_v51 }
  0xe2   :  { %v3517_v21 = vpop.f32.mrf.mxu0  ;;  %v3591_v19 = vpop.eup %2861 }
  0xe3   :  { %v2386_v58 = vmul.f32 -1.442695, %v3517_v21  ;;  %2877 = vpow2.f32 %v2383_v53 }
  0xe4   :  { %v3523_v24 = vpop.f32.mrf.mxu0  ;;  %v3595_v27 = vpop.eup %2863 }
  0xe5   :  { %v2385_v61 = vmul.f32 -1.442695, %v3523_v24 }
  0xe6   :  { %v3527_v26 = vpop.f32.mrf.mxu0  ;;  %v3599_v35 = vpop.eup %2865 }
  0xe7   :  { %v2388_v54 = vmul.f32 -1.442695, %v3527_v26 }
  0xe8   :  { %v3532_v29 = vpop.f32.mrf.mxu0  ;;  %v3604_v40 = vpop.eup %2867 }
  0xe9   :  { %v2387_v56 = vmul.f32 -1.442695, %v3532_v29  ;;  %2879 = vpow2.f32 %v2388_v54 }
  0xea   :  { %v3534_v30 = vpop.f32.mrf.mxu0  ;;  %v3607_v42 = vpop.eup %2869 }
  0xeb   :  { %4063 = vst [vmem:[#allocation12_spill] sm:$0xff] %v3534_v30  ;;  %2881 = vpow2.f32 %v2387_v56  ;;  %v2390_v22 = vmul.f32 -1.442695, %v3534_v30  ;;  %4068 = vst [vmem:[#allocation17_spill] sm:$0xff] %v3607_v42  ;;  %v3612_v47 = vpop.eup %2871 }
  0xec   :  { %v3536_v31 = vpop.f32.mrf.mxu0  ;;  %2883 = vpow2.f32 %v2386_v58  ;;  %v3615_v50 = vpop.eup %2873 }
  0xed   :  { %4064 = vst [vmem:[#allocation13_spill] sm:$0xff] %v3536_v31  ;;  %v2389_v41 = vmul.f32 -1.442695, %v3536_v31 }
  0xee   :  { %v3538_v32 = vpop.f32.mrf.mxu0  ;;  %v2876_v54 = vpop.eup %2875 }
  0xef   :  { %4065 = vst [vmem:[#allocation14_spill] sm:$0xff] %v3538_v32  ;;  %v2392_v48 = vmul.f32 -1.442695, %v3538_v32  ;;  %v891_v6 = vadd.f32 1.0, %v2876_v54 }
  0xf0   :  { %v3540_v33 = vpop.f32.mrf.mxu0  ;;  %v2878_v57 = vpop.eup %2877 }
  0xf1   :  { %4066 = vst [vmem:[#allocation15_spill] sm:$0xff] %v3540_v33  ;;  %v2391_v56 = vmul.f32 -1.442695, %v3540_v33 }
  0xf2   :  { %v3542_v34 = vpop.f32.mrf.mxu0 }
  0xf4   :  { %v3545_v36 = vpop.f32.mrf.mxu0 }
  0xf6   :  { %v3549_v39 = vpop.f32.mrf.mxu0 }
  0xf7   :  { %v2396_v58 = vmul.f32 -1.442695, %v3549_v39 }
  0xf8   :  { %v3553_v43 = vpop.f32.mrf.mxu0 }
  0xfa   :  { %v3557_v46 = vpop.f32.mrf.mxu0 }
  0xfb   :  { %v2398_v44 = vmul.f32 -1.442695, %v3557_v46 }
  0xfc   :  { %v3560_v49 = vpop.f32.mrf.mxu0 }
  0xfd   :  { %v2397_v51 = vmul.f32 -1.442695, %v3560_v49 }
  0xfe   :  { %v3564_v52 = vpop.f32.mrf.mxu0 }
  0xff   :  { %v2400_v16 = vmul.f32 -1.442695, %v3564_v52 }
 0x100   :  { %v3568_v55 = vpop.f32.mrf.mxu0 }
 0x101   :  { %v2399_v37 = vmul.f32 -1.442695, %v3568_v55 }
 0x102   :  { %v3572_v59 = vpop.f32.mrf.mxu0 }
 0x103   :  { %v2402_v60 = vmul.f32 -1.442695, %v3572_v59 }
 0x104   :  { %v3576_v62 = vpop.f32.mrf.mxu0 }
 0x105   :  { %v2401_v0 = vmul.f32 -1.442695, %v3576_v62  ;;  %2885 = vpow2.f32 %v2402_v60 }
 0x106   :  { %v3585_v3 = vpop.f32.mrf.mxu0  ;;  %2887 = vpow2.f32 %v2385_v61  ;;  %v2880_v61 = vpop.eup %2879 }
 0x107   :  { %v2404_v17 = vmul.f32 -1.442695, %v3585_v3  ;;  %2889 = vpow2.f32 %v2401_v0  ;;  %v2394_v0 = vmul.f32 -1.442695, %v3542_v34  ;;  %v895_v20 = vadd.f32 1.0, %v2880_v61 }
 0x108   :  { %v3593_v23 = vpop.f32.mrf.mxu0 }
 0x109   :  { %v2403_v28 = vmul.f32 -1.442695, %v3593_v23  ;;  %2891 = vpow2.f32 %v2404_v17  ;;  %v2395_v17 = vmul.f32 -1.442695, %v3553_v43 }
 0x10a   :  { %v3602_v38 = vpop.f32.mrf.mxu0  ;;  %2893 = vpow2.f32 %v2400_v16  ;;  %v2882_v16 = vpop.eup %2881 }
 0x10b   :  { %2895 = vpow2.f32 %v2403_v28  ;;  %v2884_v28 = vpop.eup %2883  ;;  %v894_v1 = vadd.f32 1.0, %v2882_v16 }
 0x10c   :  { %v3610_v45 = vpop.f32.mrf.mxu0  ;;  %2897 = vpow2.f32 %v2390_v22  ;;  %v893_v61 = vadd.f32 1.0, %v2884_v28 }
 0x10d   :  { %4069 = vst [vmem:[#allocation18_spill] sm:$0xff] %v3610_v45  ;;  %2899 = vpow2.f32 %v2399_v37  ;;  %v2393_v37 = vmul.f32 -1.442695, %v3545_v36 }
 0x10e   :  { %v3618_v53 = vpop.f32.mrf.mxu0  ;;  %2901 = vpow2.f32 %v2389_v41 }
 0x10f   :  { %2903 = vpow2.f32 %v2398_v44 }
 0x110   :  { %v3622_v60 = vpop.f32.mrf.mxu0  ;;  %2905 = vpow2.f32 %v2392_v48 }
 0x111   :  { %2907 = vpow2.f32 %v2397_v51 }
 0x112   :  { %v3626_v22 = vpop.f32.mrf.mxu0  ;;  %2909 = vpow2.f32 %v2391_v56  ;;  %v2886_v41 = vpop.eup %2885 }
 0x113   :  { %2911 = vpow2.f32 %v2396_v58  ;;  %v2888_v25 = vpop.eup %2887  ;;  %v909_v51 = vadd.f32 1.0, %v2886_v41 }
 0x114   :  { %v3629_v44 = vpop.f32.mrf.mxu0  ;;  %2913 = vpow2.f32 %v2394_v0  ;;  %v2890_v48 = vpop.eup %2889  ;;  %v892_v33 = vadd.f32 1.0, %v2888_v25 }
 0x115   :  { %2915 = vpow2.f32 %v2395_v17  ;;  %v908_v7 = vadd.f32 1.0, %v2890_v48 }
 0x116   :  { %v3631_v31 = vpop.f32.mrf.mxu0  ;;  %v2892_v5 = vpop.eup %2891  ;;  %2917 = vpow2.f32 %v2393_v37 }
 0x117   :  { %v2894_v42 = vpop.eup %2893  ;;  %2919 = vrcp.f32 %v895_v20  ;;  %v911_v56 = vadd.f32 1.0, %v2892_v5 }
 0x118   :  { %v3633_v4 = vpop.f32.mrf.mxu0  ;;  %v2896_v30 = vpop.eup %2895  ;;  %2921 = vrcp.f32 %v894_v1  ;;  %v907_v41 = vadd.f32 1.0, %v2894_v42 }
 0x119   :  { %v3635_v58 = vpop.eup %2897  ;;  %2923 = vrcp.f32 %v911_v56  ;;  %v910_v0 = vadd.f32 1.0, %v2896_v30  ;;  %v890_v56 = vadd.f32 1.0, %v2878_v57 }
 0x11a   :  { %v3637_v16 = vpop.f32.mrf.mxu0  ;;  %v2900_v17 = vpop.eup %2899  ;;  %2925 = vrcp.f32 %v909_v51 }
 0x11b   :  { %v3639_v37 = vpop.eup %2901  ;;  %2927 = vrcp.f32 %v910_v0  ;;  %v906_v28 = vadd.f32 1.0, %v2900_v17  ;;  %v889_v0 = vadd.f32 1.0, %v3612_v47  ;;  %v888_v17 = vadd.f32 1.0, %v3615_v50 }
 0x11c   :  { %v3641_v5 = vpop.f32.mrf.mxu0  ;;  %v2904_v20 = vpop.eup %2903  ;;  %2929 = vrcp.f32 %v893_v61 }
 0x11d   :  { %v2906_v1 = vpop.eup %2905  ;;  %2931 = vrcp.f32 %v908_v7  ;;  %v905_v25 = vadd.f32 1.0, %v2904_v20 }
 0x11e   :  { %v3643_v48 = vpop.f32.mrf.mxu0  ;;  %v2908_v30 = vpop.eup %2907  ;;  %2933 = vrcp.f32 %v892_v33 }
 0x11f   :  { %v2910_v32 = vpop.eup %2909  ;;  %2935 = vrcp.f32 %v907_v41  ;;  %v904_v54 = vadd.f32 1.0, %v2908_v30 }
 0x120   :  { %v3645_v51 = vpop.f32.mrf.mxu0  ;;  %v2912_v42 = vpop.eup %2911  ;;  %2937 = vrcp.f32 %v891_v6 }
 0x121   :  { %4070 = vst [vmem:[#allocation19_spill] sm:$0xff] %v3645_v51  ;;  %v2914_v9 = vpop.eup %2913  ;;  %2939 = vrcp.f32 %v906_v28  ;;  %v903_v33 = vadd.f32 1.0, %v2912_v42  ;;  %v887_v51 = vadd.f32 1.0, %v3599_v35  ;;  %v885_v35 = vadd.f32 1.0, %v3591_v19 }
 0x122   :  { %v3648_v61 = vpop.f32.mrf.mxu0  ;;  %v2916_v7 = vpop.eup %2915  ;;  %2941 = vrcp.f32 %v890_v56  ;;  %v901_v56 = vadd.f32 1.0, %v2914_v9  ;;  %v899_v19 = vadd.f32 1.0, %v2906_v1 }
 0x123   :  { %4071 = vst [vmem:[#allocation20_spill] sm:$0xff] %v3648_v61  ;;  %v2918_v57 = vpop.eup %2917  ;;  %2943 = vrcp.f32 %v905_v25  ;;  %v902_v6 = vadd.f32 1.0, %v2916_v7  ;;  %v886_v61 = vadd.f32 1.0, %v3604_v40 }
 0x124   :  { %v3651_v20 = vpop.f32.mrf.mxu0  ;;  %v2920_v41 = vpop.eup %2919  ;;  %2945 = vrcp.f32 %v889_v0  ;;  %v900_v7 = vadd.f32 1.0, %v2918_v57 }
 0x125   :  { %4072 = vst [vmem:[#allocation21_spill] sm:$0xff] %v3651_v20  ;;  %v2922_v47 = vpop.eup %2921  ;;  %2947 = vrcp.f32 %v904_v54  ;;  %v1087_v0 = vmul.f32 %v2920_v41, %v3527_v26 }
 0x126   :  { %v3654_v30 = vpop.f32.mrf.mxu0  ;;  %v2924_v28 = vpop.eup %2923  ;;  %2949 = vrcp.f32 %v888_v17  ;;  %v884_v17 = vadd.f32 1.0, %v3595_v27 }
 0x127   :  { %4073 = vst [vmem:[#allocation22_spill] sm:$0xff] %v3654_v30  ;;  %v2926_v50 = vpop.eup %2925  ;;  %2951 = vrcp.f32 %v903_v33  ;;  %v1103_v25 = vmul.f32 %v2924_v28, %v3585_v3  ;;  %v1086_v3 = vmul.f32 %v2922_v47, %v3532_v29 }
 0x128   :  { %v3657_v42 = vpop.f32.mrf.mxu0  ;;  %v2928_v20 = vpop.eup %2927  ;;  %2953 = vrcp.f32 %v887_v51  ;;  %v1101_v26 = vmul.f32 %v2926_v50, %v3572_v59  ;;  %v882_v59 = vadd.f32 1.0, %v3587_v15 }
 0x129   :  { %v2930_v54 = vpop.eup %2929  ;;  %2955 = vrcp.f32 %v902_v6  ;;  %v1102_v30 = vmul.f32 %v2928_v20, %v3593_v23  ;;  %2522 = vmatprep.subr.mxu1 %v1103_v25  ;;  %v883_v23 = vadd.f32 1.0, %v3583_v2  ;;  %v897_v6 = vadd.f32 1.0, %v3635_v58 }
 0x12a   :  { %v3663_v40 = vpop.f32.mrf.mxu0  ;;  %v2932_v9 = vpop.eup %2931  ;;  %2957 = vrcp.f32 %v886_v61  ;;  %2523 = vmatpush3.msra.mxu1 %v1087_v0  ;;  %v1085_v20 = vmul.f32 %v2930_v54, %v3517_v21  ;;  %v898_v61 = vadd.f32 1.0, %v2910_v32  ;;  %v2405_v0 = vmul.f32 -1.442695, %v3610_v45 }
 0x12b   :  { %v2934_v33 = vpop.eup %2933  ;;  %2959 = vrcp.f32 %v901_v56  ;;  %2524 = vmatprep.subr.mxu1 %v1102_v30  ;;  %v1100_v29 = vmul.f32 %v2932_v9, %v3576_v62  ;;  %v880_v30 = vadd.f32 1.0, %v3578_v63 }
 0x12c   :  { %v3668_v51 = vpop.f32.mrf.mxu0  ;;  %v2936_v57 = vpop.eup %2935  ;;  %2961 = vrcp.f32 %v885_v35  ;;  %2525 = vmatpush3.msra.mxu1 %v1086_v3  ;;  %v1084_v47 = vmul.f32 %v2934_v33, %v3523_v24  ;;  %v896_v24 = vadd.f32 1.0, %v3639_v37  ;;  %v2407_v3 = vmul.f32 -1.442695, %v3622_v60 }
 0x12d   :  { %v2938_v27 = vpop.eup %2937  ;;  %2963 = vrcp.f32 %v900_v7  ;;  %2526 = vmatprep.subr.mxu1 %v1101_v26  ;;  %v1099_v21 = vmul.f32 %v2936_v57, %v3564_v52  ;;  %v2408_v7 = vmul.f32 -1.442695, %v3618_v53 }
 0x12e   :  { %v3673_v1 = vpop.f32.mrf.mxu0  ;;  %v2940_v41 = vpop.eup %2939  ;;  %2965 = vrcp.f32 %v884_v17  ;;  %2527 = vmatpush3.msra.mxu1 %v1085_v20  ;;  %v1083_v28 = vmul.f32 %v2938_v27, %v3511_v14  ;;  %v2406_v14 = vmul.f32 -1.442695, %v3602_v38  ;;  %v2412_v27 = vmul.f32 -1.442695, %v3631_v31 }
 0x12f   :  { %v2942_v2 = vpop.eup %2941  ;;  %2967 = vrcp.f32 %v899_v19  ;;  %2528 = vmatprep.subr.mxu1 %v1100_v29  ;;  %v1098_v50 = vmul.f32 %v2940_v41, %v3568_v55  ;;  %v2410_v19 = vmul.f32 -1.442695, %v3626_v22  ;;  %v2411_v41 = vmul.f32 -1.442695, %v3633_v4 }
 0x130   :  { %v3679_v32 = vpop.f32.mrf.mxu0  ;;  %v2944_v62 = vpop.eup %2943  ;;  %2969 = vrcp.f32 %v883_v23  ;;  %2529 = vmatpush3.msra.mxu1 %v1084_v47  ;;  %v1082_v56 = vmul.f32 %v2942_v2, %v3513_v18  ;;  %v2409_v23 = vmul.f32 -1.442695, %v3629_v44  ;;  %v2414_v47 = vmul.f32 -1.442695, %v3637_v16 }
 0x131   :  { %v2946_v15 = vpop.eup %2945  ;;  %2971 = vrcp.f32 %v898_v61  ;;  %2530 = vmatprep.subr.mxu1 %v1099_v21  ;;  %v1097_v63 = vmul.f32 %v2944_v62, %v3557_v46  ;;  %v2413_v21 = vmul.f32 -1.442695, %v3641_v5 }
 0x132   :  { %v3685_v58 = vpop.f32.mrf.mxu0  ;;  %v2948_v52 = vpop.eup %2947  ;;  %2973 = vrcp.f32 %v882_v59  ;;  %2531 = vmatpush3.msra.mxu1 %v1083_v28  ;;  %v1081_v55 = vmul.f32 %v2946_v15, %v3507_v12  ;;  %v4074_v15 = vld [vmem:[#allocation9_spill] sm:$0xff] }
 0x133   :  { %v2950_v25 = vpop.eup %2949  ;;  %2975 = vrcp.f32 %v897_v6  ;;  %2532 = vmatprep.subr.mxu1 %v1098_v50  ;;  %v1096_v18 = vmul.f32 %v2948_v52, %v3560_v49  ;;  %v4075_v50 = vld [vmem:[#allocation19_spill] sm:$0xff] }
 0x134   :  { %v3690_v35 = vpop.f32.mrf.mxu0  ;;  %v2952_v37 = vpop.eup %2951  ;;  %2977 = vrcp.f32 %v880_v30  ;;  %2533 = vmatpush3.msra.mxu1 %v1082_v56  ;;  %v1080_v17 = vmul.f32 %v2950_v25, %v3509_v13  ;;  %v2416_v30 = vmul.f32 -1.442695, %v3643_v48  ;;  %v2415_v52 = vmul.f32 -1.442695, %v4075_v50  ;;  %v4076_v56 = vld [vmem:[#allocation14_spill] sm:$0xff] }
 0x135   :  { %v2954_v54 = vpop.eup %2953  ;;  %2979 = vrcp.f32 %v896_v24  ;;  %2534 = vmatprep.subr.mxu1 %v1097_v63  ;;  %v1095_v12 = vmul.f32 %v2952_v37, %v3549_v39  ;;  %v4077_v63 = vld [vmem:[#allocation22_spill] sm:$0xff] }
 0x136   :  { %v3696_v46 = vpop.f32.mrf.mxu0  ;;  %v2956_v9 = vpop.eup %2955  ;;  %2535 = vmatpush3.msra.mxu1 %v1081_v55  ;;  %2981 = vpow2.f32 %v2406_v14  ;;  %v1079_v57 = vmul.f32 %v2954_v54, %v3503_v10  ;;  %v2420_v14 = vmul.f32 -1.442695, %v4077_v63  ;;  %v4078_v55 = vld [vmem:[#allocation7_spill] sm:$0xff]  ;;  %v2419_v54 = vmul.f32 -1.442695, %v3657_v42 }
 0x137   :  { %v2958_v33 = vpop.eup %2957  ;;  %2536 = vmatprep.subr.mxu1 %v1096_v18  ;;  %2983 = vpow2.f32 %v2405_v0  ;;  %v1094_v20 = vmul.f32 %v2956_v9, %v3553_v43 }
 0x138   :  { %v3702_v26 = vpop.f32.mrf.mxu0  ;;  %v2960_v49 = vpop.eup %2959  ;;  %2537 = vmatpush3.msra.mxu1 %v1080_v17  ;;  %2985 = vpow2.f32 %v2408_v7  ;;  %v1078_v29 = vmul.f32 %v2958_v33, %v3505_v11  ;;  %v4079_v7 = vld [vmem:[#allocation15_spill] sm:$0xff]  ;;  %v4080_v17 = vld [vmem:[#allocation20_spill] sm:$0xff] }
 0x139   :  { %v2962_v13 = vpop.eup %2961  ;;  %2538 = vmatprep.subr.mxu1 %v1095_v12  ;;  %2987 = vpow2.f32 %v2407_v3  ;;  %v1093_v59 = vmul.f32 %v2960_v49, %v3542_v34  ;;  %v2418_v3 = vmul.f32 -1.442695, %v4080_v17 }
 0x13a   :  { %v3708_v39 = vpop.f32.mrf.mxu0  ;;  %v2964_v61 = vpop.eup %2963  ;;  %2539 = vmatpush3.msra.mxu1 %v1079_v57  ;;  %2989 = vpow2.f32 %v2410_v19  ;;  %v1077_v6 = vmul.f32 %v2962_v13, %v3499_v8  ;;  %v4081_v19 = vld [vmem:[#allocation8_spill] sm:$0xff] }
 0x13b   :  { %v2966_v10 = vpop.eup %2965  ;;  %2540 = vmatprep.subr.mxu1 %v1094_v20  ;;  %2991 = vpow2.f32 %v2409_v23  ;;  %v1092_v62 = vmul.f32 %v2964_v61, %v3545_v36  ;;  %v4082_v23 = vld [vmem:[#allocation12_spill] sm:$0xff]  ;;  %v4083_v20 = vld [vmem:[#allocation21_spill] sm:$0xff] }
 0x13c   :  { %v3714_v43 = vpop.f32.mrf.mxu0  ;;  %v2968_v2 = vpop.eup %2967  ;;  %2541 = vmatpush3.msra.mxu1 %v1078_v29  ;;  %2993 = vpow2.f32 %v2412_v27  ;;  %v1076_v24 = vmul.f32 %v2966_v10, %v4074_v15  ;;  %v2417_v27 = vmul.f32 -1.442695, %v4083_v20  ;;  %v4085_v10 = vld [vmem:[#allocation17_spill] sm:$0xff] }
 0x13d   :  { %v2970_v11 = vpop.eup %2969  ;;  %2542 = vmatprep.subr.mxu1 %v1093_v59  ;;  %2995 = vpow2.f32 %v2411_v41  ;;  %v1091_v25 = vmul.f32 %v2968_v2, %v4076_v56  ;;  %v4084_v41 = vld [vmem:[#allocation5_spill] sm:$0xff] }
 0x13e   :  { %v3720_v34 = vpop.f32.mrf.mxu0  ;;  %v2972_v28 = vpop.eup %2971  ;;  %2543 = vmatpush3.msra.mxu1 %v1077_v6  ;;  %2997 = vpow2.f32 %v2414_v47  ;;  %v1075_v0 = vmul.f32 %v2970_v11, %v4078_v55  ;;  %v1073_v59 = vmul.f32 %v4085_v10, %v4084_v41  ;;  %v4086_v6 = vld [vmem:[#allocation6_spill] sm:$0xff]  ;;  %v4087_v11 = vld [vmem:[#allocation13_spill] sm:$0xff]  ;;  %v2428_v10 = vmul.f32 -1.442695, %v3696_v46 }
 0x13f   :  { %v2974_v8 = vpop.eup %2973  ;;  %2544 = vmatprep.subr.mxu1 %v1092_v62  ;;  %2999 = vpow2.f32 %v2413_v21  ;;  %v1090_v9 = vmul.f32 %v2972_v28, %v4079_v7  ;;  %v2432_v15 = vmul.f32 -1.442695, %v3720_v34 }
 0x140   :  { %v3726_v36 = vpop.f32.mrf.mxu0  ;;  %v2976_v37 = vpop.eup %2975  ;;  %2545 = vmatpush3.msra.mxu1 %v1076_v24  ;;  %3001 = vpow2.f32 %v2416_v30  ;;  %v1074_v49 = vmul.f32 %v2974_v8, %v4081_v19 }
 0x141   :  { %v2978_v18 = vpop.eup %2977  ;;  %2546 = vmatprep.subr.mxu1 %v1091_v25  ;;  %3003 = vpow2.f32 %v2415_v52  ;;  %v1089_v13 = vmul.f32 %v2976_v37, %v4082_v23  ;;  %v4088_v52 = vld [vmem:[#allocation16_spill] sm:$0xff]  ;;  %v2422_v37 = vmul.f32 -1.442695, %v3663_v40  ;;  %v2429_v23 = vmul.f32 -1.442695, %v3714_v43 }
 0x142   :  { %v3732_v33 = vpop.f32.mrf.mxu0  ;;  %v2980_v12 = vpop.eup %2979  ;;  %2547 = vmatpush3.msra.mxu1 %v1075_v0  ;;  %3005 = vpow2.f32 %v2420_v14  ;;  %v1072_v21 = vmul.f32 %v2978_v18, %v4086_v6  ;;  %v1154_v8 = vcombine.high %v4088_v52, %v4088_v52  ;;  %v4089_v18 = vld [vmem:[#allocation11_spill] sm:$0xff] }
 0x143   :  { %v2434_v57 = vmul.f32 -1.442695, %v3732_v33  ;;  %2548 = vmatprep.subr.mxu1 %v1090_v9  ;;  %v3740_v29 = vpop.eup %2981  ;;  %3007 = vpow2.f32 %v2419_v54  ;;  %v1088_v62 = vmul.f32 %v2980_v12, %v4087_v11  ;;  %v2431_v54 = vmul.f32 -1.442695, %v3726_v36 }
 0x144   :  { %v3738_v61 = vpop.f32.mrf.mxu0  ;;  %2549 = vmatpush3.msra.mxu1 %v1074_v49  ;;  %v3745_v2 = vpop.eup %2983  ;;  %3009 = vpow2.f32 %v2418_v3  ;;  %v2421_v9 = vmul.f32 -1.442695, %v3668_v51  ;;  %v2430_v12 = vmul.f32 -1.442695, %v3708_v39  ;;  %v2424_v49 = vmul.f32 -1.442695, %v3673_v1 }
 0x145   :  { %v2433_v47 = vmul.f32 -1.442695, %v3738_v61  ;;  %2550 = vmatprep.subr.mxu1 %v1089_v13  ;;  %v3751_v28 = vpop.eup %2985  ;;  %3011 = vpow2.f32 %v2434_v57 }
 0x146   :  { %v3749_v30 = vpop.f32.mrf.mxu0  ;;  %2551 = vmatpush3.msra.mxu1 %v1073_v59  ;;  %v3757_v56 = vpop.eup %2987  ;;  %3013 = vpow2.f32 %v2417_v27  ;;  %v2423_v27 = vmul.f32 -1.442695, %v3679_v32 }
 0x147   :  { %v2436_v24 = vmul.f32 -1.442695, %v3749_v30  ;;  %2552 = vmatprep.subr.mxu1 %v1088_v62  ;;  %v3761_v14 = vpop.eup %2989  ;;  %3015 = vpow2.f32 %v2433_v47  ;;  %v2426_v47 = vmul.f32 -1.442695, %v3685_v58  ;;  %v2425_v62 = vmul.f32 -1.442695, %v3690_v35 }
 0x148   :  { %v3759_v25 = vpop.f32.mrf.mxu0  ;;  %2553 = vmatpush3.msra.mxu1 %v1072_v21  ;;  %v3765_v0 = vpop.eup %2991  ;;  %v2427_v21 = vmul.f32 -1.442695, %v3702_v26 }
 0x149   :  { %v2435_v55 = vmul.f32 -1.442695, %v3759_v25  ;;  %3017 = vpow2.f32 %v2436_v24  ;;  %1224 = vmatmul.mubr.f32.vlgmr.msra.gmra.mxu1 %v4089_v18  ;;  %v3769_v7 = vpop.eup %2993 }
 0x14a   :  { %3019 = vpow2.f32 %v2432_v15  ;;  %1293 = vmatprep.mubr.f32.mxu1 %v1154_v8  ;;  %v3772_v3 = vpop.eup %2995 }
 0x14b   :  { %3021 = vpow2.f32 %v2435_v55  ;;  %v2998_v19 = vpop.eup %2997 }
 0x14c   :  { %3023 = vpow2.f32 %v2422_v37  ;;  %v3776_v57 = vpop.eup %2999 }
 0x14d   :  { %3025 = vpow2.f32 %v2431_v54  ;;  %v3002_v13 = vpop.eup %3001 }
 0x14e   :  { %3027 = vpow2.f32 %v2421_v9  ;;  %v3004_v41 = vpop.eup %3003 }
 0x14f   :  { %3029 = vpow2.f32 %v2430_v12  ;;  %v3006_v59 = vpop.eup %3005 }
 0x150   :  { %3031 = vpow2.f32 %v2424_v49  ;;  %v3008_v6 = vpop.eup %3007  ;;  %v927_v24 = vadd.f32 1.0, %v3006_v59 }
 0x151   :  { %3033 = vpow2.f32 %v2429_v23  ;;  %v3010_v11 = vpop.eup %3009  ;;  %v926_v37 = vadd.f32 1.0, %v3008_v6 }
 0x152   :  { %3035 = vpow2.f32 %v2423_v27  ;;  %v3012_v15 = vpop.eup %3011  ;;  %v925_v23 = vadd.f32 1.0, %v3010_v11 }
 0x153   :  { %3037 = vpow2.f32 %v2428_v10  ;;  %v3014_v8 = vpop.eup %3013  ;;  %v941_v18 = vadd.f32 1.0, %v3012_v15 }
 0x154   :  { %3039 = vpow2.f32 %v2426_v47  ;;  %v3016_v55 = vpop.eup %3015  ;;  %v924_v45 = vadd.f32 1.0, %v3014_v8 }
 0x155   :  { %3041 = vpow2.f32 %v2427_v21  ;;  %v940_v52 = vadd.f32 1.0, %v3016_v55 }
 0x156   :  { %v3018_v54 = vpop.eup %3017  ;;  %3043 = vpow2.f32 %v2425_v62  ;;  %v923_v62 = vadd.f32 1.0, %v3002_v13 }
 0x157   :  { %v3020_v9 = vpop.eup %3019  ;;  %3045 = vrcp.f32 %v927_v24  ;;  %v943_v12 = vadd.f32 1.0, %v3018_v54 }
 0x158   :  { %v3022_v49 = vpop.eup %3021  ;;  %3047 = vrcp.f32 %v926_v37  ;;  %v939_v6 = vadd.f32 1.0, %v3020_v9  ;;  %v922_v37 = vadd.f32 1.0, %v3004_v41  ;;  %v919_v41 = vadd.f32 1.0, %v3769_v7 }
 0x159   :  { %v3784_v27 = vpop.eup %3023  ;;  %3049 = vrcp.f32 %v943_v12  ;;  %v942_v59 = vadd.f32 1.0, %v3022_v49  ;;  %v921_v49 = vadd.f32 1.0, %v2998_v19  ;;  %v918_v19 = vadd.f32 1.0, %v3772_v3 }
 0x15a   :  { %v3026_v10 = vpop.eup %3025  ;;  %3051 = vrcp.f32 %v941_v18  ;;  %v916_v3 = vadd.f32 1.0, %v3765_v0 }
 0x15b   :  { %v3786_v47 = vpop.eup %3027  ;;  %3053 = vrcp.f32 %v942_v59  ;;  %v938_v24 = vadd.f32 1.0, %v3026_v10  ;;  %v920_v59 = vadd.f32 1.0, %v3776_v57 }
 0x15c   :  { %v3030_v21 = vpop.eup %3029  ;;  %3055 = vrcp.f32 %v925_v23 }
 0x15d   :  { %v3032_v15 = vpop.eup %3031  ;;  %3057 = vrcp.f32 %v940_v52  ;;  %v937_v55 = vadd.f32 1.0, %v3030_v21 }
 0x15e   :  { %v3034_v11 = vpop.eup %3033  ;;  %3059 = vrcp.f32 %v924_v45 }
 0x15f   :  { %v3036_v54 = vpop.eup %3035  ;;  %3061 = vrcp.f32 %v939_v6  ;;  %v936_v18 = vadd.f32 1.0, %v3034_v11  ;;  %v917_v11 = vadd.f32 1.0, %v3761_v14 }
 0x160   :  { %v3038_v12 = vpop.eup %3037  ;;  %3063 = vrcp.f32 %v923_v62 }
 0x161   :  { %v3040_v8 = vpop.eup %3039  ;;  %3065 = vrcp.f32 %v938_v24  ;;  %v935_v23 = vadd.f32 1.0, %v3038_v12 }
 0x162   :  { %v3042_v9 = vpop.eup %3041  ;;  %3067 = vrcp.f32 %v922_v37  ;;  %v933_v62 = vadd.f32 1.0, %v3040_v8 }
 0x163   :  { %v3044_v13 = vpop.eup %3043  ;;  %3069 = vrcp.f32 %v937_v55  ;;  %v934_v10 = vadd.f32 1.0, %v3042_v9  ;;  %v915_v9 = vadd.f32 1.0, %v3751_v28  ;;  %v929_v28 = vadd.f32 1.0, %v3784_v27 }
 0x164   :  { %v3046_v52 = vpop.eup %3045  ;;  %3071 = vrcp.f32 %v921_v49  ;;  %v932_v55 = vadd.f32 1.0, %v3044_v13  ;;  %v930_v13 = vadd.f32 1.0, %v3036_v54  ;;  %v913_v54 = vadd.f32 1.0, %v3740_v29 }
 0x165   :  { %v3048_v45 = vpop.eup %3047  ;;  %3073 = vrcp.f32 %v936_v18  ;;  %v1119_v37 = vmul.f32 %v3046_v52, %v4077_v63  ;;  %v931_v18 = vadd.f32 1.0, %v3032_v15  ;;  %v914_v15 = vadd.f32 1.0, %v3757_v56 }
 0x166   :  { %v3050_v6 = vpop.eup %3049  ;;  %3075 = vrcp.f32 %v920_v59  ;;  %v1118_v8 = vmul.f32 %v3048_v45, %v3657_v42  ;;  %v928_v56 = vadd.f32 1.0, %v3786_v47  ;;  %v912_v27 = vadd.f32 1.0, %v3745_v2 }
 0x167   :  { %v3052_v21 = vpop.eup %3051  ;;  %3077 = vrcp.f32 %v935_v23  ;;  %v1135_v57 = vmul.f32 %v3050_v6, %v3749_v30 }
 0x168   :  { %v3054_v24 = vpop.eup %3053  ;;  %3079 = vrcp.f32 %v919_v41  ;;  %v1133_v14 = vmul.f32 %v3052_v21, %v3732_v33 }
 0x169   :  { %v3056_v7 = vpop.eup %3055  ;;  %3081 = vrcp.f32 %v934_v10  ;;  %v1134_v12 = vmul.f32 %v3054_v24, %v3759_v25  ;;  %2557 = vmatprep.subr.mxu1 %v1135_v57 }
 0x16a   :  { %v3058_v49 = vpop.eup %3057  ;;  %3083 = vrcp.f32 %v918_v19  ;;  %2558 = vmatpush3.msra.mxu1 %v1119_v37  ;;  %v1117_v25 = vmul.f32 %v3056_v7, %v4080_v17 }
 0x16b   :  { %v3060_v30 = vpop.eup %3059  ;;  %3085 = vrcp.f32 %v933_v62  ;;  %2559 = vmatprep.subr.mxu1 %v1134_v12  ;;  %v1132_v0 = vmul.f32 %v3058_v49, %v3738_v61 }
 0x16c   :  { %v3062_v63 = vpop.eup %3061  ;;  %3087 = vrcp.f32 %v917_v11  ;;  %2560 = vmatpush3.msra.mxu1 %v1118_v8  ;;  %v1116_v33 = vmul.f32 %v3060_v30, %v4083_v20 }
 0x16d   :  { %v3064_v59 = vpop.eup %3063  ;;  %3089 = vrcp.f32 %v932_v55  ;;  %2561 = vmatprep.subr.mxu1 %v1133_v14  ;;  %v1131_v17 = vmul.f32 %v3062_v63, %v3720_v34  ;;  %v3152_v63 = vmov 0.0  }
 0x16e   :  { %v3066_v42 = vpop.eup %3065  ;;  %3091 = vrcp.f32 %v916_v3  ;;  %2562 = vmatpush3.msra.mxu1 %v1117_v25  ;;  %v1115_v61 = vmul.f32 %v3064_v59, %v3643_v48 }
 0x16f   :  { %v3068_v23 = vpop.eup %3067  ;;  %3093 = vrcp.f32 %v931_v18  ;;  %2563 = vmatprep.subr.mxu1 %v1132_v0  ;;  %v1130_v20 = vmul.f32 %v3066_v42, %v3726_v36 }
 0x170   :  { %v3070_v52 = vpop.eup %3069  ;;  %3095 = vrcp.f32 %v915_v9  ;;  %2564 = vmatpush3.msra.mxu1 %v1116_v33  ;;  %v1114_v34 = vmul.f32 %v3068_v23, %v4075_v50  ;;  %v1387_v33 = vld [vmem:[%s4032_s7 + $0x10] sm:$0xff]  ;;  %v1386_v23 = vld [vmem:[%s4032_s7 + $0x8] sm:$0xff] }
 0x171   :  { %v3072_v41 = vpop.eup %3071  ;;  %3097 = vrcp.f32 %v930_v13  ;;  %2565 = vmatprep.subr.mxu1 %v1131_v17  ;;  %v1129_v29 = vmul.f32 %v3070_v52, %v3708_v39  ;;  %v3864_v17 = vld [vmem:[%s4027_s2 + $0x8] sm:$0xff] }
 0x172   :  { %v3074_v45 = vpop.eup %3073  ;;  %3099 = vrcp.f32 %v914_v15  ;;  %2566 = vmatpush3.msra.mxu1 %v1115_v61  ;;  %v1113_v47 = vmul.f32 %v3072_v41, %v3637_v16  ;;  %v3848_v15 = vld [vmem:[%s4027_s2] sm:$0xff]  ;;  %v4092_v61 = vld [vmem:[#allocation10_spill] sm:$0xff]  ;;  %s3154_s2 = smov 96  }
 0x173   :  { %v3076_v10 = vpop.eup %3075  ;;  %3101 = vrcp.f32 %v929_v28  ;;  %2567 = vmatprep.subr.mxu1 %v1130_v20  ;;  %v1128_v36 = vmul.f32 %v3074_v45, %v3714_v43  ;;  %v1385_v28 = vld [vmem:[%s4032_s7] sm:$0xff]  ;;  %v1391_v41 = vsub.s32 0, %v4092_v61 }
 0x174   :  { %v3078_v48 = vpop.eup %3077  ;;  %3103 = vrcp.f32 %v913_v54  ;;  %2568 = vmatpush3.msra.mxu1 %v1114_v34  ;;  %v1112_v50 = vmul.f32 %v3076_v10, %v3641_v5 }
 0x175   :  { %v3080_v6 = vpop.eup %3079  ;;  %3105 = vrcp.f32 %v928_v56  ;;  %2569 = vmatprep.subr.mxu1 %v1129_v29  ;;  %v1127_v21 = vmul.f32 %v3078_v48, %v3696_v46  ;;  %v3877_v56 = vld [vmem:[%s4036_s11] sm:$0xff] }
 0x176   :  { %v3082_v2 = vpop.eup %3081  ;;  %3107 = vrcp.f32 %v912_v27  ;;  %2570 = vmatpush3.msra.mxu1 %v1113_v47  ;;  %v1111_v62 = vmul.f32 %v3080_v6, %v3631_v31  ;;  %v1392_v45 = vrot.slane %v3877_v56, %v1391_v41  ;;  %v3155_v47 = vmov 1966171168  }
 0x177   :  { %v3084_v19 = vpop.eup %3083  ;;  %2571 = vmatprep.subr.mxu1 %v1128_v36  ;;  %v1126_v57 = vmul.f32 %v3082_v2, %v3702_v26  ;;  %v1641_v6 = vunpack.c.l.s4 %v3155_v47 }
 0x178   :  { %v3086_v39 = vpop.eup %3085  ;;  %2572 = vmatpush3.msra.mxu1 %v1112_v50  ;;  %v1110_v43 = vmul.f32 %v3084_v19, %v3633_v4  ;;  %v2445_v50 = vld.sshfl [vmem:[%s4028_s3] sm:$0x11 pattern:$0x75316420]  ;;  %s3156_s3 = smov 64  }
 0x179   :  { %v3088_v16 = vpop.eup %3087  ;;  %2573 = vmatprep.subr.mxu1 %v1127_v21  ;;  %v1125_v5 = vmul.f32 %v3086_v39, %v3685_v58  ;;  %v1642_v36 = vunpack.c.0.s8 %v1641_v6  ;;  %v1639_v19 = vcombine.high %v2445_v50, %v2445_v50 }
 0x17a   :  { %v3090_v24 = vpop.eup %3089  ;;  %2574 = vmatpush3.msra.mxu1 %v1111_v62  ;;  %v1109_v46 = vmul.f32 %v3088_v16, %v3626_v22 }
 0x17b   :  { %v3092_v11 = vpop.eup %3091  ;;  %2575 = vmatprep.subr.mxu1 %v1126_v57  ;;  %v1124_v31 = vmul.f32 %v3090_v24, %v3690_v35  ;;  %v1645_v2 = vsub.s32 %v1642_v36, %v4092_v61 }
 0x17c   :  { %v3094_v37 = vpop.eup %3093  ;;  %2576 = vmatpush3.msra.mxu1 %v1110_v43  ;;  %v1108_v26 = vmul.f32 %v3092_v11, %v3629_v44 }
 0x17d   :  { %v3096_v7 = vpop.eup %3095  ;;  %2577 = vmatprep.subr.mxu1 %v1125_v5  ;;  %v1123_v4 = vmul.f32 %v3094_v37, %v3673_v1  ;;  %v1646_v21 = vrot.slane %v2445_v50, %v1645_v2  ;;  %v1653_v62 = vrot.slane %v1639_v19, %v1645_v2 }
 0x17e   :  { %v3098_v55 = vpop.eup %3097  ;;  %2578 = vmatpush3.msra.mxu1 %v1109_v46  ;;  %v1107_v58 = vmul.f32 %v3096_v7, %v3618_v53  ;;  %v4090_v53 = vld [vmem:[#allocation18_spill] sm:$0xff] }
 0x17f   :  { %v3100_v12 = vpop.eup %3099  ;;  %2579 = vmatprep.subr.mxu1 %v1124_v31  ;;  %v1122_v22 = vmul.f32 %v3098_v55, %v3679_v32  ;;  %v4091_v32 = vld [vmem:[#allocation16_spill] sm:$0xff]  ;;  %v1657_v39 = vrot.slane %v1646_v21, %v1391_v41  ;;  %v1661_v11 = vrot.slane %v1653_v62, %v1391_v41  ;;  %v1972_v62 = vld [vmem:[%s4034_s9 + $0x8] sm:$0xff] }
 0x180   :  { %v3102_v49 = vpop.eup %3101  ;;  %2580 = vmatpush3.msra.mxu1 %v1108_v26  ;;  %v1106_v35 = vmul.f32 %v3100_v12, %v3622_v60  ;;  %v1300_v60 = vld [vmem:[%s4030_s5 + $0x8] sm:$0xff]  ;;  %v1974_v21 = vld [vmem:[%s4034_s9 + $0x18] sm:$0xff] }
 0x181   :  { %v3104_v3 = vpop.eup %3103  ;;  %2581 = vmatprep.subr.mxu1 %v1123_v4  ;;  %v1121_v44 = vmul.f32 %v3102_v49, %v3663_v40  ;;  %v1388_v40 = vld [vmem:[%s4032_s7 + $0x18] sm:$0xff] }
 0x182   :  { %v3106_v8 = vpop.eup %3105  ;;  %2582 = vmatpush3.msra.mxu1 %v1107_v58  ;;  %v1105_v18 = vmul.f32 %v3104_v3, %v3602_v38  ;;  %v1299_v38 = vld [vmem:[%s4030_s5] sm:$0xff] }
 0x183   :  { %v3108_v30 = vpop.eup %3107  ;;  %2583 = vmatprep.subr.mxu1 %v1122_v22  ;;  %v1120_v1 = vmul.f32 %v3106_v8, %v3668_v51 }
 0x184   :  { %2584 = vmatpush3.msra.mxu1 %v1106_v35  ;;  %v1104_v14 = vmul.f32 %v3108_v30, %v4090_v53 }
 0x185   :  { %2585 = vmatprep.subr.mxu1 %v1121_v44 }
 0x186   :  { %2586 = vmatpush3.msra.mxu1 %v1105_v18 }
 0x187   :  { %2587 = vmatprep.subr.mxu1 %v1120_v1 }
 0x188   :  { %2588 = vmatpush3.msra.mxu1 %v1104_v14 }
 0x189   :  { %1294 = vmatmul.mubr.f32.vlgmr.msra.gmra.mxu1 %v4091_v32  ;;  %2745 = vmatprep.subr.mxu1 %v3152_v63  ;;  %v1844_v32 = vld [vmem:[%s4033_s8 + $0x18] sm:$0xff] }
 0x18a   :  { %2746 = vmatpush3.msra.mxu1 %v1300_v60  ;;  %2749 = vmatprep.mubr.msk.f32.mxu1 %vm3153_vm1, %v3152_v63 }
 0x18b   :  { %2747 = vmatprep.subr.mxu1 %v3152_v63 }
 0x18c   :  { %2748 = vmatpush3.msra.mxu1 %v1299_v38 }
 0x18d   :  { %2752 = vmatprep.subr.mxu1 %v1388_v40 }
 0x209   :  { %v2554_v51 = vpop.f32.mrf.mxu1 }
 0x20b   :  { %v2555_v9 = vpop.f32.mrf.mxu1 }
 0x20c   :  { %v2556_v13 = vadd.f32 %v2555_v9, %v2554_v51  ;;  %v1843_v51 = vld [vmem:[%s4033_s8 + $0x10] sm:$0xff]  ;;  %v1842_v9 = vld [vmem:[%s4033_s8 + $0x8] sm:$0xff] }
 0x249   :  { %v2589_v25 = vpop.f32.mrf.mxu1 }
 0x24b   :  { %v2590_v59 = vpop.f32.mrf.mxu1 }
 0x24c   :  { %v2591_v0 = vadd.f32 %v2590_v59, %v2589_v25  ;;  %v1841_v25 = vld [vmem:[%s4033_s8] sm:$0xff] }
 0x24e   :  { %v1296_v42 = vadd.f32 %v2591_v0, %v2556_v13 }
 0x250   :  { %2750 = vmatmul.mubr.msk.f32.vlgmr.msra.gmra.mxu1 %vm1308_vm2, %v1296_v42 }
 0x251   :  { %2753 = vmatpush3.msra.mxu1 %v1388_v40  ;;  %2760 = vmatprep.mubr.msk.f32.mxu1 %vm110_vm0, %v3848_v15 }
 0x252   :  { %2754 = vmatprep.subr.mxu1 %v1387_v33 }
 0x253   :  { %2755 = vmatpush3.msra.mxu1 %v1387_v33  ;;  %v1847_v33 = vsub.s32 2, %v4092_v61 }
 0x254   :  { %2756 = vmatprep.subr.mxu1 %v1386_v23 }
 0x255   :  { %2757 = vmatpush3.msra.mxu1 %v1386_v23  ;;  %v1848_v23 = vrot.slane %v3877_v56, %v1847_v33 }
 0x256   :  { %2758 = vmatprep.subr.mxu1 %v1385_v28 }
 0x257   :  { %2759 = vmatpush3.msra.mxu1 %v1385_v28 }
 0x258   :  { %2761 = vmatmul.mubr.msk.f32.vlgmr.msra.gmra.mxu1 %vm110_vm0, %v3864_v17  ;;  %2763 = vmatprep.subr.mxu1 %v3152_v63 }
 0x259   :  { %2765 = vmatprep.mubr.msk.f32.mxu1 %vm3153_vm1, %v3152_v63 }
 0x310   :  { %v3871_v52 = vpop.f32.mrf.mxu1 }
 0x312   :  { %v2751_v54 = vpop.f32.mrf.mxu1 }
 0x318   :  { %v2762_v20 = vpop.f32.mrf.mxu1 }
 0x319   :  { %v1471_v10 = vadd.f32 %v2762_v20, %v1392_v45 }
 0x31a   :  { %v1465_v27 = vpop.f32.mrf.mxu1 }
 0x31b   :  { %v1466_v34 = vadd.f32 %v1465_v27, %v1392_v45 }
 0x31d   :  { %1475 = vrot.lane.b32.xlu0 %v1466_v34, %s3154_s2 }
 0x321   :  { %1552 = vrot.lane.b32.xlu0 %v1471_v10, %s3154_s2 }
 0x38f   :  { %v1476_v29 = vpop.permute.xlu0 %1475 }
 0x390   :  { %2764 = vmatpush3.xpose.msk.msra.mxu1 %vm110_vm0, %v1476_v29 }
 0x391   :  { %2768 = vmatprep.subr.mxu1 %v3152_v63 }
 0x393   :  { %2766 = vmatmul.mubr.msk.f32.vlgmr.msra.gmra.mxu1 %vm110_vm0, %v1466_v34  ;;  %v1553_v48 = vpop.permute.xlu0 %1552 }
 0x394   :  { %2769 = vmatpush3.xpose.msk.msra.mxu1 %vm110_vm0, %v1553_v48  ;;  %2770 = vmatprep.mubr.msk.f32.mxu1 %vm3153_vm1, %v3152_v63 }
 0x395   :  { %2773 = vmatprep.subr.mxu1 %v3152_v63 }
 0x397   :  { %2771 = vmatmul.mubr.msk.f32.vlgmr.msra.gmra.mxu1 %vm110_vm0, %v1471_v10 }
 0x398   :  { %2775 = vmatprep.mubr.msk.f32.mxu1 %vm3153_vm1, %v3152_v63 }
 0x453   :  { %v1547_v16 = vpop.f32.mrf.mxu1 }
 0x454   :  { %v1628_v57 = vmul.f32 0.17677669, %v1547_v16  ;;  %v1971_v16 = vld [vmem:[%s4034_s9] sm:$0xff] }
 0x455   :  { %v2767_v24 = vpop.f32.mrf.mxu1 }
 0x456   :  { %v1664_v43 = vadd.f32 %v1657_v39, %v1628_v57  ;;  %v1973_v39 = vld [vmem:[%s4034_s9 + $0x10] sm:$0xff]  ;;  %v2093_v57 = vld [vmem:[%s4035_s10 + $0x78] sm:$0xff] }
 0x457   :  { %v1624_v5 = vpop.f32.mrf.mxu1  ;;  %v2092_v24 = vld [vmem:[%s4035_s10 + $0x70] sm:$0xff]  ;;  %2805 = vmatprep.subr.mxu0 %v2093_v57 }
 0x458   :  { %v1629_v37 = vmul.f32 0.17677669, %v1624_v5  ;;  %v1667_v46 = vsel %vm1666_vm3, %v1664_v43, -inf  ;;  %2806 = vmatpush3.msra.mxu0 %v2093_v57  ;;  %v2089_v5 = vld [vmem:[%s4035_s10 + $0x58] sm:$0xff] }
 0x459   :  { %1668 = vmax.xlane.f32.xlu1 %v1667_v46  ;;  %v2772_v7 = vpop.f32.mrf.mxu1  ;;  %2807 = vmatprep.subr.mxu0 %v2092_v24  ;;  %v2087_v46 = vld [vmem:[%s4035_s10 + $0x48] sm:$0xff] }
 0x45a   :  { %v1665_v31 = vadd.f32 %v1661_v11, %v1629_v37  ;;  %2808 = vmatpush3.msra.mxu0 %v2092_v24  ;;  %v2090_v11 = vld [vmem:[%s4035_s10 + $0x60] sm:$0xff]  ;;  %v2088_v37 = vld [vmem:[%s4035_s10 + $0x50] sm:$0xff] }
 0x45b   :  { %v2086_v7 = vld [vmem:[%s4035_s10 + $0x40] sm:$0xff] }
 0x45c   :  { %v1670_v55 = vsel %vm1666_vm3, %v1665_v31, -inf }
 0x45d   :  { %1671 = vmax.xlane.f32.xlu1 %v1670_v55  ;;  %v2084_v55 = vld [vmem:[%s4035_s10 + $0x30] sm:$0xff] }
 0x46e   :  { %1689 = vrot.lane.b32.xlu1 %v1466_v34, %s3156_s3 }
 0x4e2   :  { %v1669_v26 = vpop.xlane.xlu1 %1668 }
 0x4e3   :  { %v1673_v12 = vsub.f32 %v1664_v43, %v1669_v26  ;;  %v2091_v43 = vld [vmem:[%s4035_s10 + $0x68] sm:$0xff] }
 0x4e4   :  { %2809 = vmatprep.subr.mxu0 %v2091_v43  ;;  %v2083_v26 = vld [vmem:[%s4035_s10 + $0x28] sm:$0xff] }
 0x4e5   :  { %v1675_v4 = vmul.f32 1.442695, %v1673_v12  ;;  %2810 = vmatpush3.msra.mxu0 %v2091_v43  ;;  %v2082_v12 = vld [vmem:[%s4035_s10 + $0x20] sm:$0xff] }
 0x4e6   :  { %v1672_v49 = vpop.xlane.xlu1 %1671  ;;  %2811 = vmatprep.subr.mxu0 %v2090_v11 }
 0x4e7   :  { %3109 = vpow2.f32 %v1675_v4  ;;  %v1674_v58 = vsub.f32 %v1665_v31, %v1672_v49  ;;  %2812 = vmatpush3.msra.mxu0 %v2090_v11  ;;  %v2085_v31 = vld [vmem:[%s4035_s10 + $0x38] sm:$0xff] }
 0x4e8   :  { %2813 = vmatprep.subr.mxu0 %v2089_v5 }
 0x4e9   :  { %v1677_v3 = vmul.f32 1.442695, %v1674_v58  ;;  %2814 = vmatpush3.msra.mxu0 %v2089_v5 }
 0x4ea   :  { %v1690_v22 = vpop.permute.xlu1 %1689  ;;  %2815 = vmatprep.subr.mxu0 %v2088_v37 }
 0x4eb   :  { %3111 = vpow2.f32 %v1677_v3  ;;  %2774 = vmatpush3.msra.mxu1 %v1690_v22  ;;  %2816 = vmatpush3.msra.mxu0 %v2088_v37 }
 0x4ec   :  { %2778 = vmatprep.subr.mxu1 %v3152_v63  ;;  %2817 = vmatprep.subr.mxu0 %v2087_v46 }
 0x4ed   :  { %2818 = vmatpush3.msra.mxu0 %v2087_v46 }
 0x4ee   :  { %2819 = vmatprep.subr.mxu0 %v2086_v7 }
 0x4ef   :  { %2820 = vmatpush3.msra.mxu0 %v2086_v7 }
 0x4f0   :  { %2821 = vmatprep.subr.mxu0 %v2085_v31 }
 0x4f1   :  { %2822 = vmatpush3.msra.mxu0 %v2085_v31 }
 0x4f2   :  { %2823 = vmatprep.subr.mxu0 %v2084_v55 }
 0x4f3   :  { %2824 = vmatpush3.msra.mxu0 %v2084_v55 }
 0x4f4   :  { %v3110_v8 = vpop.eup %3109  ;;  %2825 = vmatprep.subr.mxu0 %v2083_v26 }
 0x4f5   :  { %v1679_v35 = vsel %vm1666_vm3, %v3110_v8, 0.0  ;;  %2826 = vmatpush3.msra.mxu0 %v2083_v26 }
 0x4f6   :  { %1680 = vadd.xlane.f32.xlu0 %v1679_v35  ;;  %2827 = vmatprep.subr.mxu0 %v2082_v12  ;;  %v1961_v35 = vsub.s32 4, %v4092_v61 }
 0x4f7   :  { %2828 = vmatpush3.msra.mxu0 %v2082_v12 }
 0x4f8   :  { %v3112_v30 = vpop.eup %3111 }
 0x4f9   :  { %v1682_v44 = vsel %vm1666_vm3, %v3112_v30, 0.0 }
 0x4fa   :  { %1683 = vadd.xlane.f32.xlu1 %v1682_v44  ;;  %v1962_v44 = vrot.slane %v3877_v56, %v1961_v35 }
 0x50b   :  { %1765 = vrot.lane.b32.xlu1 %v1471_v10, %s3156_s3 }
 0x57f   :  { %v1681_v18 = vpop.xlane.xlu0 %1680 }
 0x580   :  { %3113 = vrcp.f32 %v1681_v18 }
 0x583   :  { %v1684_v1 = vpop.xlane.xlu1 %1683 }
 0x584   :  { %3115 = vrcp.f32 %v1684_v1 }
 0x587   :  { %v1766_v60 = vpop.permute.xlu1 %1765 }
 0x58d   :  { %v3114_v53 = vpop.eup %3113 }
 0x58e   :  { %v1686_v14 = vmul.f32 %v3114_v53, %v3110_v8 }
 0x590   :  { %2776 = vmatmul.mubr.msk.f32.vlgmr.msra.gmra.mxu1 %vm1666_vm3, %v1686_v14 }
 0x591   :  { %v3116_v38 = vpop.eup %3115  ;;  %2779 = vmatpush3.msra.mxu1 %v1766_v60  ;;  %2780 = vmatprep.mubr.msk.f32.mxu1 %vm3153_vm1, %v3152_v63 }
 0x592   :  { %v1688_v40 = vmul.f32 %v3116_v38, %v3112_v30  ;;  %2783 = vmatprep.subr.mxu1 %v1844_v32  ;;  %v1967_v30 = vsub.s32 5, %v4092_v61 }
 0x594   :  { %2781 = vmatmul.mubr.msk.f32.vlgmr.msra.gmra.mxu1 %vm1666_vm3, %v1688_v40  ;;  %v1968_v53 = vrot.slane %v3877_v56, %v1967_v30  ;;  %v2437_v40 = vld [vmem:[%s4031_s6] ss:$0 sm:$0xff] }
 0x595   :  { %2784 = vmatpush3.msra.mxu1 %v1844_v32 }
 0x596   :  { %2785 = vmatprep.subr.mxu1 %v1843_v51 }
 0x597   :  { %2786 = vmatpush3.msra.mxu1 %v1843_v51 }
 0x598   :  { %2787 = vmatprep.subr.mxu1 %v1842_v9 }
 0x599   :  { %2788 = vmatpush3.msra.mxu1 %v1842_v9 }
 0x59a   :  { %2789 = vmatprep.subr.mxu1 %v1841_v25 }
 0x59b   :  { %2790 = vmatpush3.msra.mxu1 %v1841_v25  ;;  %v1379_v25 = vadd.f32 %v2437_v40, %v3871_v52  ;;  %v2079_v52 = vld [vmem:[%s4035_s10 + $0x8] sm:$0xff] }
 0x59c   :  { %2794 = vmatprep.subr.mxu1 %v1974_v21 }
 0x650   :  { %v1761_v59 = vpop.f32.mrf.mxu1 }
 0x651   :  { %2791 = vmatprep.mubr.msk.f32.mxu1 %vm110_vm0, %v1761_v59  ;;  %v2081_v59 = vld [vmem:[%s4035_s10 + $0x18] sm:$0xff] }
 0x652   :  { %v2777_v13 = vpop.f32.mrf.mxu1  ;;  %2829 = vmatprep.subr.mxu0 %v2081_v59 }
 0x653   :  { %2830 = vmatpush3.msra.mxu0 %v2081_v59  ;;  %v2080_v13 = vld [vmem:[%s4035_s10 + $0x10] sm:$0xff] }
 0x654   :  { %v1837_v0 = vpop.f32.mrf.mxu1  ;;  %2831 = vmatprep.subr.mxu0 %v2080_v13 }
 0x655   :  { %2792 = vmatmul.mubr.msk.f32.vlgmr.msra.gmra.mxu1 %vm110_vm0, %v1837_v0  ;;  %2832 = vmatpush3.msra.mxu0 %v2080_v13  ;;  %v1977_v0 = vsub.s32 1, %v4092_v61 }
 0x656   :  { %v2782_v42 = vpop.f32.mrf.mxu1  ;;  %2795 = vmatpush3.msra.mxu1 %v1974_v21  ;;  %2833 = vmatprep.subr.mxu0 %v2079_v52 }
 0x657   :  { %2796 = vmatprep.subr.mxu1 %v1973_v39  ;;  %2834 = vmatpush3.msra.mxu0 %v2079_v52  ;;  %v1978_v42 = vrot.slane %v3877_v56, %v1977_v0 }
 0x658   :  { %2797 = vmatpush3.msra.mxu1 %v1973_v39 }
 0x659   :  { %2798 = vmatprep.subr.mxu1 %v1972_v62 }
 0x65a   :  { %2799 = vmatpush3.msra.mxu1 %v1972_v62  ;;  %v2096_v62 = vsub.s32 3, %v4092_v61 }
 0x65b   :  { %2800 = vmatprep.subr.mxu1 %v1971_v16 }
 0x65c   :  { %2801 = vmatpush3.msra.mxu1 %v1971_v16  ;;  %v2097_v16 = vrot.slane %v3877_v56, %v2096_v62 }
 0x65d   :  { %2840 = vmatprep.subr.mxu1 %v3152_v63 }
 0x715   :  { %v2793_v28 = vpop.f32.mrf.mxu1 }
 0x716   :  { %v1927_v54 = vadd.f32 %v2793_v28, %v1848_v23 }
 0x717   :  { %v1921_v41 = vpop.f32.mrf.mxu1 }
 0x718   :  { %v1922_v20 = vadd.f32 %v1921_v41, %v1848_v23  ;;  %v1931_v45 = vadd.f32 %v1927_v54, %v3864_v17 }
 0x71a   :  { %v1935_v27 = vsel %vm110_vm0, %v1931_v45, 0.0  ;;  %v1930_v34 = vadd.f32 %v1922_v20, %v3848_v15 }
 0x71b   :  { %1936 = vadd.xlane.f32.xlu0 %v1935_v27 }
 0x71c   :  { %v1932_v10 = vsel %vm110_vm0, %v1930_v34, 0.0 }
 0x71d   :  { %1933 = vadd.xlane.f32.xlu1 %v1932_v10 }
 0x7a4   :  { %v1937_v29 = vpop.xlane.xlu0 %1936 }
 0x7a5   :  { %v1940_v48 = vmul.f32 0.03125, %v1937_v29 }
 0x7a6   :  { %v1934_v47 = vpop.xlane.xlu1 %1933 }
 0x7a7   :  { %v1939_v6 = vmul.f32 0.03125, %v1934_v47  ;;  %v3923_v36 = vsub.f32 %v1931_v45, %v1940_v48 }
 0x7a9   :  { %v3925_v2 = vsub.f32 %v1930_v34, %v1939_v6  ;;  %v1944_v15 = vmul.f32 %v3923_v36, %v3923_v36 }
 0x7ab   :  { %v1943_v50 = vmul.f32 %v3925_v2, %v3925_v2  ;;  %v1948_v19 = vsel %vm110_vm0, %v1944_v15, 0.0 }
 0x7ad   :  { %v1945_v17 = vsel %vm110_vm0, %v1943_v50, 0.0 }
 0x7ae   :  { %1946 = vadd.xlane.f32.xlu0 %v1945_v17 }
 0x7b2   :  { %1949 = vadd.xlane.f32.xlu0 %v1948_v19 }
 0x837   :  { %v1947_v4 = vpop.xlane.xlu0 %1946 }
 0x838   :  { %v1951_v49 = vmul.f32 0.03125, %v1947_v4 }
 0x83a   :  { %v1953_v58 = vadd.f32 1e-12, %v1951_v49 }
 0x83b   :  { %v1950_v3 = vpop.xlane.xlu0 %1949 }
 0x83c   :  { %3117 = vrsqrt.f32 %v1953_v58  ;;  %v1952_v22 = vmul.f32 0.03125, %v1950_v3 }
 0x83e   :  { %v1954_v8 = vadd.f32 1e-12, %v1952_v22 }
 0x840   :  { %3119 = vrsqrt.f32 %v1954_v8 }
 0x849   :  { %v3118_v18 = vpop.eup %3117 }
 0x84a   :  { %v1957_v1 = vmul.f32 %v3118_v18, %v3925_v2 }
 0x84c   :  { %v1963_v14 = vmul.f32 %v1962_v44, %v1957_v1 }
 0x84d   :  { %v3120_v32 = vpop.eup %3119 }
 0x84e   :  { %v1958_v60 = vmul.f32 %v3120_v32, %v3923_v36  ;;  %v1969_v38 = vadd.f32 %v1968_v53, %v1963_v14  ;;  %v2203_v14 = vsub.s32 6, %v4092_v61  ;;  %v2209_v32 = vsub.s32 7, %v4092_v61 }
 0x850   :  { %v1964_v51 = vmul.f32 %v1962_v44, %v1958_v60  ;;  %2802 = vmatprep.mubr.msk.f32.mxu1 %vm110_vm0, %v1969_v38  ;;  %v2204_v60 = vrot.slane %v3877_v56, %v2203_v14 }
 0x852   :  { %v1970_v9 = vadd.f32 %v1968_v53, %v1964_v51  ;;  %v2210_v51 = vrot.slane %v3877_v56, %v2209_v32 }
 0x854   :  { %2803 = vmatmul.mubr.msk.f32.vlgmr.msra.gmra.mxu1 %vm110_vm0, %v1970_v9 }
 0x855   :  { %2841 = vmatpush3.xpose.msk.msra.mxu1 %vm110_vm0, %v1379_v25  ;;  %2842 = vmatprep.mubr.msk.f32.mxu1 %vm3153_vm1, %v3152_v63  ;;  %v2078_v63 = vld [vmem:[%s4035_s10] sm:$0xff]  ;;  %s3157_s10 = smov [#allocation2]  }
 0x856   :  { %2835 = vmatprep.subr.mxu0 %v2078_v63  ;;  %s2301_s7 = sshll.u32 %s3157_s10, 4  ;;  %s2302_s7 = int_to_ptr.vmem [resolvable:$true] %s2301_s7 }
 0x857   :  { %2836 = vmatpush3.msra.mxu0 %v2078_v63  ;;  %s3129_s9 = scalar_lea.vmem %s2302_s7, 32  ;;  %p3134_p1 = scmp.lt.s32.totalorder %s2302_s7, %s2302_s7 }
 0x858   :  { %p3130_p0 = scmp.ne.s32.totalorder %s2302_s7, %s3129_s9  ;;  %p3135_p2 = scmp.lt.s32.totalorder %s3129_s9, %s3129_s9 }
 0x85a   :  { %p3136_p3 = por %p3135_p2, %p3134_p1 }
 0x85c   :  { %p3137_p4 = pnand %p3136_p3, %p3130_p0 }
 0x914   :  { %v2804_v33 = vpop.f32.mrf.mxu1 }
 0x915   :  { %v2057_v23 = vadd.f32 %v2804_v33, %v1978_v42 }
 0x916   :  { %v2051_v28 = vpop.f32.mrf.mxu1 }
 0x917   :  { %v2061_v54 = vmul.f32 %v2057_v23, %v2057_v23  ;;  %v2052_v41 = vadd.f32 %v2051_v28, %v1978_v42 }
 0x919   :  { %v2063_v20 = vmul.f32 %v2061_v54, %v2057_v23  ;;  %v2060_v45 = vmul.f32 %v2052_v41, %v2052_v41 }
 0x91b   :  { %v2065_v27 = vmul.f32 0.044715, %v2063_v20  ;;  %v2062_v34 = vmul.f32 %v2060_v45, %v2052_v41 }
 0x91d   :  { %v2067_v10 = vadd.f32 %v2065_v27, %v2057_v23  ;;  %v2064_v29 = vmul.f32 0.044715, %v2062_v34 }
 0x91f   :  { %v2069_v48 = vmul.f32 0.7978846, %v2067_v10  ;;  %v2066_v47 = vadd.f32 %v2064_v29, %v2052_v41 }
 0x921   :  { %3121 = vtanh.f32 %v2069_v48  ;;  %v2068_v6 = vmul.f32 0.7978846, %v2066_v47 }
 0x923   :  { %3123 = vtanh.f32 %v2068_v6 }
 0x92e   :  { %v3122_v36 = vpop.eup %3121 }
 0x92f   :  { %v2073_v2 = vadd.f32 1.0, %v3122_v36 }
 0x930   :  { %v3124_v50 = vpop.eup %3123 }
 0x931   :  { %v2072_v17 = vadd.f32 1.0, %v3124_v50  ;;  %v2075_v15 = vmul.f32 0.5, %v2073_v2 }
 0x933   :  { %v2074_v19 = vmul.f32 0.5, %v2072_v17  ;;  %v2077_v39 = vmul.f32 %v2075_v15, %v2057_v23 }
 0x935   :  { %v2076_v21 = vmul.f32 %v2074_v19, %v2052_v41 }
 0x937   :  { %2837 = vmatprep.mubr.f32.mxu0 %v2076_v21 }
 0x938   :  { %2838 = vmatmul.mubr.f32.vlgmr.msra.gmra.mxu0 %v2077_v39 }
 0x9f8   :  { %v2839_v57 = vpop.f32.mrf.mxu0 }
 0x9f9   :  { %v2170_v24 = vadd.f32 %v2839_v57, %v2097_v16 }
 0x9fa   :  { %v2164_v43 = vpop.f32.mrf.mxu0 }
 0x9fb   :  { %v2165_v11 = vadd.f32 %v2164_v43, %v2097_v16  ;;  %v2174_v5 = vadd.f32 %v2170_v24, %v1970_v9 }
 0x9fd   :  { %v2178_v37 = vsel %vm110_vm0, %v2174_v5, 0.0  ;;  %v2173_v46 = vadd.f32 %v2165_v11, %v1969_v38 }
 0x9fe   :  { %2179 = vadd.xlane.f32.xlu0 %v2178_v37 }
 0x9ff   :  { %v2175_v7 = vsel %vm110_vm0, %v2173_v46, 0.0 }
 0xa02   :  { %2176 = vadd.xlane.f32.xlu0 %v2175_v7 }
 0xa87   :  { %v2180_v31 = vpop.xlane.xlu0 %2179 }
 0xa88   :  { %v2182_v55 = vmul.f32 0.03125, %v2180_v31 }
 0xa8a   :  { %v2184_v26 = vsub.f32 %v2174_v5, %v2182_v55 }
 0xa8b   :  { %v2177_v12 = vpop.xlane.xlu0 %2176 }
 0xa8c   :  { %v2181_v4 = vmul.f32 0.03125, %v2177_v12  ;;  %v2186_v49 = vmul.f32 %v2184_v26, %v2184_v26 }
 0xa8e   :  { %v2183_v58 = vsub.f32 %v2173_v46, %v2181_v4  ;;  %v2190_v3 = vsel %vm110_vm0, %v2186_v49, 0.0 }
 0xa8f   :  { %2191 = vadd.xlane.f32.xlu0 %v2190_v3 }
 0xa90   :  { %v2185_v22 = vmul.f32 %v2183_v58, %v2183_v58 }
 0xa92   :  { %v2187_v8 = vsel %vm110_vm0, %v2185_v22, 0.0 }
 0xa93   :  { %2188 = vadd.xlane.f32.xlu0 %v2187_v8 }
 0xb18   :  { %v2192_v35 = vpop.xlane.xlu0 %2191 }
 0xb19   :  { %v2194_v30 = vmul.f32 0.03125, %v2192_v35 }
 0xb1b   :  { %v2196_v44 = vadd.f32 1e-12, %v2194_v30 }
 0xb1c   :  { %v2189_v18 = vpop.xlane.xlu0 %2188 }
 0xb1d   :  { %3125 = vrsqrt.f32 %v2196_v44  ;;  %v2193_v1 = vmul.f32 0.03125, %v2189_v18 }
 0xb1f   :  { %v2195_v53 = vadd.f32 1e-12, %v2193_v1 }
 0xb21   :  { %3127 = vrsqrt.f32 %v2195_v53 }
 0xb2a   :  { %v3126_v38 = vpop.eup %3125 }
 0xb2b   :  { %v2200_v40 = vmul.f32 %v3126_v38, %v2184_v26 }
 0xb2d   :  { %v2206_v9 = vmul.f32 %v2204_v60, %v2200_v40 }
 0xb2e   :  { %v3128_v25 = vpop.eup %3127 }
 0xb2f   :  { %v2199_v59 = vmul.f32 %v3128_v25, %v2183_v58  ;;  %v2212_v13 = vadd.f32 %v2210_v51, %v2206_v9 }
 0xb31   :  { %v2205_v52 = vmul.f32 %v2204_v60, %v2199_v59  ;;  %v2215_v0 = vrot.slane %v2212_v13, 7 }
 0xb33   :  { %v2211_v63 = vadd.f32 %v2210_v51, %v2205_v52 }
 0xb35   :  { %v2217_v42 = vsel %vm2216_vm4, %v2215_v0, %v2211_v63 }
 0xb36   :  { %2843 = vmatmul.mubr.msk.f32.vlgmr.msra.gmra.mxu1 %vm110_vm0, %v2217_v42 }
 0xbf6   :  { %v2289_v61 = vpop.f32.mrf.mxu1 }
 0xbf7   :  { %2294 = vst.msk [vmem:[#allocation2] sm:$0x3] %vm2293_vm5, %v2289_v61 }
 0xbf8   :  { %v2844_v33 = vpop.f32.mrf.mxu1 }
 0xbf9   :  { %3140 = shalt.err (!%p3137_p4)
}
 0xbfa   :  { %2304 = dma.vmem_to_hbm [thread:$0]  %s2302_s7, 32, %s4037_s12, [#allocation3]  }
 0xbfb   :  { %3149 = dma.done.wait [#allocation3], 32  }
 0xbfc   :  { %3150 = vsyncadd [#allocation3], 4294967264 }
 0xbfd   :  { %2308 = vsyncpa [#allocation3], 1 }

</bundles_post_ra>
